<compile_context>
chip_gen: v7x
topology: tpu7x:2x2x1
jax: 0.10.0
libtpu: 0.0.40
codegen_flags: <defaults>
</compile_context>

<pallas_src>
import jax
import jax.numpy as jnp
import numpy as np
from jax.experimental import pallas as pl
from jax.experimental.pallas import tpu as pltpu


def _layernorm(y, gamma, beta, eps=1e-5):
    mu = y.mean(axis=-1, keepdims=True)
    var = ((y - mu) ** 2).mean(axis=-1, keepdims=True)
    return (y - mu) * jax.lax.rsqrt(var + eps) * gamma + beta


def transformer_block_kernel(
    x_ref,                      # (TB, t, k) f32
    wq_ref, wk_ref, wv_ref,     # (h, k, d) bf16   (pre-transposed, per-head)
    wu_ref,                     # (h, d, k) bf16   (pre-sliced unify weights)
    bu_ref,                     # (1, k) f32
    g1_ref, be1_ref,            # (1, k) f32
    w1_ref,                     # (k, 4k) bf16
    bf1_ref,                    # (1, 4k) f32
    w2_ref,                     # (4k, k) bf16
    bf2_ref,                    # (1, k) f32
    g2_ref, be2_ref,            # (1, k) f32
    o_ref,                      # (TB, t, k)
):
    tb, t, k = x_ref.shape
    h = wq_ref.shape[0]
    d = wq_ref.shape[2]
    scale = float(d) ** (-0.25)

    x = x_ref[...].astype(jnp.float32)          # residual path stays f32
    x_b = x.astype(jnp.bfloat16)                # MXU operand

    # Per-head attention; unify projection accumulated per head (no concat, no lane slices).
    attended = jnp.zeros((tb, t, k), jnp.float32)
    for hh in range(h):
        q = jnp.einsum('btk,kd->btd', x_b, wq_ref[hh],
                       preferred_element_type=jnp.float32) * scale
        kk = jnp.einsum('btk,kd->btd', x_b, wk_ref[hh],
                        preferred_element_type=jnp.float32) * scale
        v = jnp.einsum('btk,kd->btd', x_b, wv_ref[hh],
                       preferred_element_type=jnp.float32)

        logits = jnp.einsum('btd,bsd->bts',
                            q.astype(jnp.bfloat16), kk.astype(jnp.bfloat16),
                            preferred_element_type=jnp.float32)
        logits = logits - logits.max(axis=-1, keepdims=True)
        p = jnp.exp(logits)
        p = p * pl.reciprocal(p.sum(axis=-1, keepdims=True), approx=True)

        ctx = jnp.einsum('bts,bsd->btd',
                         p.astype(jnp.bfloat16), v.astype(jnp.bfloat16),
                         preferred_element_type=jnp.float32)
        attended = attended + jnp.einsum('btd,dk->btk',
                                         ctx.astype(jnp.bfloat16), wu_ref[hh],
                                         preferred_element_type=jnp.float32)

    attended = attended + bu_ref[0]
    y = _layernorm(attended + x, g1_ref[0], be1_ref[0])

    # Feed-forward + residual + LayerNorm 2 (M = TB*t rows per matmul).
    hdn = jnp.einsum('btk,kn->btn', y.astype(jnp.bfloat16), w1_ref[...],
                     preferred_element_type=jnp.float32) + bf1_ref[0]
    hdn = jnp.maximum(hdn, 0.0)
    ff = jnp.einsum('btn,nk->btk', hdn.astype(jnp.bfloat16), w2_ref[...],
                    preferred_element_type=jnp.float32) + bf2_ref[0]
    out = _layernorm(ff + y, g2_ref[0], be2_ref[0])

    o_ref[...] = out.astype(o_ref.dtype)


def _prepare_params(params, k, heads):
    """One-time host-side prep: pre-transpose / pre-slice weights, cast to bf16."""
    (wq, wk, wv, wu, bu, g1, be1, w1, bf1, w2, bf2, g2, be2) = params
    h, d = heads, k

    def per_head_in_out(w):                      # (h*d, k) -> (h, k, d)
        return jnp.swapaxes(w.reshape(h, d, k), 1, 2).astype(jnp.bfloat16)

    wq_h = per_head_in_out(wq)
    wk_h = per_head_in_out(wk)
    wv_h = per_head_in_out(wv)
    wu_h = wu.T.reshape(h, d, k).astype(jnp.bfloat16)   # (h, d, k)
    w1t = w1.T.astype(jnp.bfloat16)                     # (k, 4k)
    w2t = w2.T.astype(jnp.bfloat16)                     # (4k, k)
    return (wq_h, wk_h, wv_h, wu_h, bu, g1, be1, w1t, bf1, w2t, bf2, g2, be2)


def _pick_block_b(b, t, target_rows=256):
    """Fold enough batch into the matmul M dim to approach a full MXU pass."""
    bb = max(1, min(b, target_rows // max(t, 1)))
    while bb > 1 and b % bb:
        bb -= 1
    return bb


def transformer_block(x, params, heads):
    b, t, k = x.shape
    kparams = _prepare_params(params, k, heads)
    block_b = _pick_block_b(b, t)

    def full_spec(a):
        nd = a.ndim
        return pl.BlockSpec(a.shape, lambda i, _nd=nd: (0,) * _nd)

    in_specs = [pl.BlockSpec((block_b, t, k), lambda i: (i, 0, 0))]
    in_specs += [full_spec(p) for p in kparams]

    # Explicit scoped-VMEM budget sized from the resident tiles (weights +
    # activations + double buffers) with headroom; capped to stay v7x-safe.
    weight_bytes = sum(int(p.size) * p.dtype.itemsize for p in kparams)
    act_bytes = 4 * block_b * t * max(4 * k, heads * k, t)
    est = 2 * weight_bytes + 24 * act_bytes + (2 << 20)
    vmem_limit = int(min(max(est, 16 << 20), 48 << 20))

    return pl.pallas_call(
        transformer_block_kernel,
        out_shape=jax.ShapeDtypeStruct((b, t, k), x.dtype),
        grid_spec=pltpu.PrefetchScalarGridSpec(
            num_scalar_prefetch=0,
            grid=(b // block_b,),
            in_specs=in_specs,
            out_specs=pl.BlockSpec((block_b, t, k), lambda i: (i, 0, 0)),
        ),
        compiler_params=pltpu.CompilerParams(
            dimension_semantics=("parallel",),
            vmem_limit_bytes=vmem_limit,
        ),
    )(x, *kparams)


def reference(x, params):
    (wq, wk, wv, wu, bu, g1, be1, w1, bf1, w2, bf2, g2, be2) = params
    b, t, k = x.shape
    h = wq.shape[0] // k
    scale = float(k) ** 0.25

    q = (x @ wq.T).reshape(b, t, h, k).transpose(0, 2, 1, 3) / scale
    kk = (x @ wk.T).reshape(b, t, h, k).transpose(0, 2, 1, 3) / scale
    v = (x @ wv.T).reshape(b, t, h, k).transpose(0, 2, 1, 3)
    logits = jnp.einsum("bhtd,bhsd->bhts", q, kk)
    p = jax.nn.softmax(logits, axis=-1)
    ctx = jnp.einsum("bhts,bhsd->bhtd", p, v).transpose(0, 2, 1, 3).reshape(b, t, h * k)
    attended = ctx @ wu.T + bu[0]
    y = _layernorm(attended + x, g1[0], be1[0])
    ff = jnp.maximum(y @ w1.T + bf1[0], 0.0) @ w2.T + bf2[0]
    return _layernorm(ff + y, g2[0], be2[0])


def init_params(key, k, heads):
    hidden = 4 * k
    keys = jax.random.split(key, 8)

    def lin_w(kk_, out_dim, in_dim):
        bound = 1.0 / np.sqrt(in_dim)
        return jax.random.uniform(kk_, (out_dim, in_dim), jnp.float32, -bound, bound)

    wq = lin_w(keys[0], k * heads, k)
    wk = lin_w(keys[1], k * heads, k)
    wv = lin_w(keys[2], k * heads, k)
    wu = lin_w(keys[3], k, heads * k)
    bu = jax.random.uniform(keys[4], (1, k), jnp.float32, -0.05, 0.05)
    g1 = jnp.ones((1, k), jnp.float32)
    be1 = jnp.zeros((1, k), jnp.float32)
    w1 = lin_w(keys[5], hidden, k)
    bf1 = jax.random.uniform(keys[6], (1, hidden), jnp.float32, -0.05, 0.05)
    w2 = lin_w(keys[7], k, hidden)
    bf2 = jnp.zeros((1, k), jnp.float32)
    g2 = jnp.ones((1, k), jnp.float32)
    be2 = jnp.zeros((1, k), jnp.float32)
    return (wq, wk, wv, wu, bu, g1, be1, w1, bf1, w2, bf2, g2, be2)


if __name__ == "__main__":
    B, T, K, HEADS = 2, 8, 32, 4

    key = jax.random.PRNGKey(0)
    k_x, k_p = jax.random.split(key)
    x = jax.random.normal(k_x, (B, T, K), dtype=jnp.float32)
    params = init_params(k_p, K, HEADS)

    out = jax.block_until_ready(transformer_block(x, params, HEADS))
    ref = jax.block_until_ready(reference(x, params))

    # bf16 MXU operands (f32 accumulation) -> compare at bf16-level tolerance.
    np.testing.assert_allclose(np.asarray(out), np.asarray(ref), rtol=3e-2, atol=3e-2)

    print("KERNEL_OK")
</pallas_src>

<mosaic_0001>
module attributes {stable_mosaic.version = 11 : i64} {
  func.func @transformer_block_kernel(%arg0: i32, %arg1: memref<2x8x32xf32, #tpu.memory_space<vmem>>, %arg2: memref<4x32x32xbf16, #tpu.memory_space<vmem>>, %arg3: memref<4x32x32xbf16, #tpu.memory_space<vmem>>, %arg4: memref<4x32x32xbf16, #tpu.memory_space<vmem>>, %arg5: memref<4x32x32xbf16, #tpu.memory_space<vmem>>, %arg6: memref<1x32xf32, #tpu.memory_space<vmem>>, %arg7: memref<1x32xf32, #tpu.memory_space<vmem>>, %arg8: memref<1x32xf32, #tpu.memory_space<vmem>>, %arg9: memref<32x128xbf16, #tpu.memory_space<vmem>>, %arg10: memref<1x128xf32, #tpu.memory_space<vmem>>, %arg11: memref<128x32xbf16, #tpu.memory_space<vmem>>, %arg12: memref<1x32xf32, #tpu.memory_space<vmem>>, %arg13: memref<1x32xf32, #tpu.memory_space<vmem>>, %arg14: memref<1x32xf32, #tpu.memory_space<vmem>>, %arg15: memref<2x8x32xf32, #tpu.memory_space<vmem>>) attributes {dimension_semantics = [#tpu.dimension_semantics<parallel>], iteration_bounds = array<i64: 1>, scalar_prefetch = 0 : i64, scratch_operands = 0 : i64, tpu.core_type = #tpu.core_type<tc>, window_params = [{transform_indices = @transform_0, window_bounds = array<i64: 2, 8, 32>}, {pipeline_mode = #tpu.pipeline_mode<synchronous>, transform_indices = @transform_1, window_bounds = array<i64: 4, 32, 32>}, {pipeline_mode = #tpu.pipeline_mode<synchronous>, transform_indices = @transform_2, window_bounds = array<i64: 4, 32, 32>}, {pipeline_mode = #tpu.pipeline_mode<synchronous>, transform_indices = @transform_3, window_bounds = array<i64: 4, 32, 32>}, {pipeline_mode = #tpu.pipeline_mode<synchronous>, transform_indices = @transform_4, window_bounds = array<i64: 4, 32, 32>}, {pipeline_mode = #tpu.pipeline_mode<synchronous>, transform_indices = @transform_5, window_bounds = array<i64: 1, 32>}, {pipeline_mode = #tpu.pipeline_mode<synchronous>, transform_indices = @transform_6, window_bounds = array<i64: 1, 32>}, {pipeline_mode = #tpu.pipeline_mode<synchronous>, transform_indices = @transform_7, window_bounds = array<i64: 1, 32>}, {pipeline_mode = #tpu.pipeline_mode<synchronous>, transform_indices = @transform_8, window_bounds = array<i64: 32, 128>}, {pipeline_mode = #tpu.pipeline_mode<synchronous>, transform_indices = @transform_9, window_bounds = array<i64: 1, 128>}, {pipeline_mode = #tpu.pipeline_mode<synchronous>, transform_indices = @transform_10, window_bounds = array<i64: 128, 32>}, {pipeline_mode = #tpu.pipeline_mode<synchronous>, transform_indices = @transform_11, window_bounds = array<i64: 1, 32>}, {pipeline_mode = #tpu.pipeline_mode<synchronous>, transform_indices = @transform_12, window_bounds = array<i64: 1, 32>}, {pipeline_mode = #tpu.pipeline_mode<synchronous>, transform_indices = @transform_13, window_bounds = array<i64: 1, 32>}, {transform_indices = @transform_14, window_bounds = array<i64: 2, 8, 32>}]} {
    %c0 = arith.constant 0 : index
    %c0_0 = arith.constant 0 : index
    %c0_1 = arith.constant 0 : index
    %0 = vector.load %arg1[%c0, %c0_0, %c0_1] : memref<2x8x32xf32, #tpu.memory_space<vmem>>, vector<2x8x32xf32>
    %1 = arith.truncf %0 : vector<2x8x32xf32> to vector<2x8x32xbf16>
    %cst = arith.constant 0.000000e+00 : f32
    %2 = vector.broadcast %cst : f32 to vector<2x8x32xf32>
    %c0_2 = arith.constant 0 : index
    %c0_3 = arith.constant 0 : index
    %c0_4 = arith.constant 0 : index
    %3 = vector.load %arg2[%c0_2, %c0_3, %c0_4] : memref<4x32x32xbf16, #tpu.memory_space<vmem>>, vector<1x32x32xbf16>
    %4 = vector.shape_cast %3 : vector<1x32x32xbf16> to vector<32x32xbf16>
    "tpu.trace_start"() <{level = 10 : i32, message = "btk,kd->btd"}> : () -> ()
    %cst_5 = arith.constant dense<0.000000e+00> : vector<2x8x32xf32>
    %5 = tpu.matmul %1, %4, %cst_5 {dimension_numbers = #tpu.dot_dimension_numbers<[2], [0], [0, 1], [1], [0, 0, 0, 1, 1, 1], [], []>} : vector<2x8x32xbf16>, vector<32x32xbf16>, vector<2x8x32xf32> -> vector<2x8x32xf32>
    "tpu.trace_stop"() : () -> ()
    %cst_6 = arith.constant 0.420448214 : f32
    %6 = vector.broadcast %cst_6 : f32 to vector<2x8x32xf32>
    %7 = arith.mulf %5, %6 : vector<2x8x32xf32>
    %c0_7 = arith.constant 0 : index
    %c0_8 = arith.constant 0 : index
    %c0_9 = arith.constant 0 : index
    %8 = vector.load %arg3[%c0_7, %c0_8, %c0_9] : memref<4x32x32xbf16, #tpu.memory_space<vmem>>, vector<1x32x32xbf16>
    %9 = vector.shape_cast %8 : vector<1x32x32xbf16> to vector<32x32xbf16>
    "tpu.trace_start"() <{level = 10 : i32, message = "btk,kd->btd"}> : () -> ()
    %cst_10 = arith.constant dense<0.000000e+00> : vector<2x8x32xf32>
    %10 = tpu.matmul %1, %9, %cst_10 {dimension_numbers = #tpu.dot_dimension_numbers<[2], [0], [0, 1], [1], [0, 0, 0, 1, 1, 1], [], []>} : vector<2x8x32xbf16>, vector<32x32xbf16>, vector<2x8x32xf32> -> vector<2x8x32xf32>
    "tpu.trace_stop"() : () -> ()
    %cst_11 = arith.constant 0.420448214 : f32
    %11 = vector.broadcast %cst_11 : f32 to vector<2x8x32xf32>
    %12 = arith.mulf %10, %11 : vector<2x8x32xf32>
    %c0_12 = arith.constant 0 : index
    %c0_13 = arith.constant 0 : index
    %c0_14 = arith.constant 0 : index
    %13 = vector.load %arg4[%c0_12, %c0_13, %c0_14] : memref<4x32x32xbf16, #tpu.memory_space<vmem>>, vector<1x32x32xbf16>
    %14 = vector.shape_cast %13 : vector<1x32x32xbf16> to vector<32x32xbf16>
    "tpu.trace_start"() <{level = 10 : i32, message = "btk,kd->btd"}> : () -> ()
    %cst_15 = arith.constant dense<0.000000e+00> : vector<2x8x32xf32>
    %15 = tpu.matmul %1, %14, %cst_15 {dimension_numbers = #tpu.dot_dimension_numbers<[2], [0], [0, 1], [1], [0, 0, 0, 1, 1, 1], [], []>} : vector<2x8x32xbf16>, vector<32x32xbf16>, vector<2x8x32xf32> -> vector<2x8x32xf32>
    "tpu.trace_stop"() : () -> ()
    %16 = arith.truncf %7 : vector<2x8x32xf32> to vector<2x8x32xbf16>
    %17 = arith.truncf %12 : vector<2x8x32xf32> to vector<2x8x32xbf16>
    "tpu.trace_start"() <{level = 10 : i32, message = "btd,bsd->bts"}> : () -> ()
    %cst_16 = arith.constant dense<0.000000e+00> : vector<2x8x8xf32>
    %18 = tpu.matmul %16, %17, %cst_16 {dimension_numbers = #tpu.dot_dimension_numbers<[2], [2], [1], [1], [0, 0, 0, 1, 1, 1], [0], [0]>} : vector<2x8x32xbf16>, vector<2x8x32xbf16>, vector<2x8x8xf32> -> vector<2x8x8xf32>
    "tpu.trace_stop"() : () -> ()
    %cst_17 = arith.constant dense<0xFF800000> : vector<2x8xf32>
    %19 = vector.multi_reduction <maximumf>, %18, %cst_17 [2] : vector<2x8x8xf32> to vector<2x8xf32>
    %20 = vector.shape_cast %19 : vector<2x8xf32> to vector<2x8x1xf32>
    %21 = vector.broadcast %20 : vector<2x8x1xf32> to vector<2x8x8xf32>
    %22 = arith.subf %18, %21 : vector<2x8x8xf32>
    %23 = math.exp %22 : vector<2x8x8xf32>
    %cst_18 = arith.constant dense<0.000000e+00> : vector<2x8xf32>
    %24 = vector.multi_reduction <add>, %23, %cst_18 [2] : vector<2x8x8xf32> to vector<2x8xf32>
    %25 = vector.shape_cast %24 : vector<2x8xf32> to vector<2x8x1xf32>
    %26 = tpu.reciprocal %25 {approx = true} : vector<2x8x1xf32> -> vector<2x8x1xf32>
    %27 = vector.broadcast %26 : vector<2x8x1xf32> to vector<2x8x8xf32>
    %28 = arith.mulf %23, %27 : vector<2x8x8xf32>
    %29 = arith.truncf %28 : vector<2x8x8xf32> to vector<2x8x8xbf16>
    %30 = arith.truncf %15 : vector<2x8x32xf32> to vector<2x8x32xbf16>
    "tpu.trace_start"() <{level = 10 : i32, message = "bts,bsd->btd"}> : () -> ()
    %cst_19 = arith.constant dense<0.000000e+00> : vector<2x8x32xf32>
    %31 = tpu.matmul %29, %30, %cst_19 {dimension_numbers = #tpu.dot_dimension_numbers<[2], [1], [1], [2], [0, 0, 0, 1, 1, 2], [0], [0]>} : vector<2x8x8xbf16>, vector<2x8x32xbf16>, vector<2x8x32xf32> -> vector<2x8x32xf32>
    "tpu.trace_stop"() : () -> ()
    %32 = arith.truncf %31 : vector<2x8x32xf32> to vector<2x8x32xbf16>
    %c0_20 = arith.constant 0 : index
    %c0_21 = arith.constant 0 : index
    %c0_22 = arith.constant 0 : index
    %33 = vector.load %arg5[%c0_20, %c0_21, %c0_22] : memref<4x32x32xbf16, #tpu.memory_space<vmem>>, vector<1x32x32xbf16>
    %34 = vector.shape_cast %33 : vector<1x32x32xbf16> to vector<32x32xbf16>
    "tpu.trace_start"() <{level = 10 : i32, message = "btd,dk->btk"}> : () -> ()
    %cst_23 = arith.constant dense<0.000000e+00> : vector<2x8x32xf32>
    %35 = tpu.matmul %32, %34, %cst_23 {dimension_numbers = #tpu.dot_dimension_numbers<[2], [0], [0, 1], [1], [0, 0, 0, 1, 1, 1], [], []>} : vector<2x8x32xbf16>, vector<32x32xbf16>, vector<2x8x32xf32> -> vector<2x8x32xf32>
    "tpu.trace_stop"() : () -> ()
    %36 = arith.addf %2, %35 : vector<2x8x32xf32>
    %c1 = arith.constant 1 : index
    %c0_24 = arith.constant 0 : index
    %c0_25 = arith.constant 0 : index
    %37 = vector.load %arg2[%c1, %c0_24, %c0_25] : memref<4x32x32xbf16, #tpu.memory_space<vmem>>, vector<1x32x32xbf16>
    %38 = vector.shape_cast %37 : vector<1x32x32xbf16> to vector<32x32xbf16>
    "tpu.trace_start"() <{level = 10 : i32, message = "btk,kd->btd"}> : () -> ()
    %cst_26 = arith.constant dense<0.000000e+00> : vector<2x8x32xf32>
    %39 = tpu.matmul %1, %38, %cst_26 {dimension_numbers = #tpu.dot_dimension_numbers<[2], [0], [0, 1], [1], [0, 0, 0, 1, 1, 1], [], []>} : vector<2x8x32xbf16>, vector<32x32xbf16>, vector<2x8x32xf32> -> vector<2x8x32xf32>
    "tpu.trace_stop"() : () -> ()
    %cst_27 = arith.constant 0.420448214 : f32
    %40 = vector.broadcast %cst_27 : f32 to vector<2x8x32xf32>
    %41 = arith.mulf %39, %40 : vector<2x8x32xf32>
    %c1_28 = arith.constant 1 : index
    %c0_29 = arith.constant 0 : index
    %c0_30 = arith.constant 0 : index
    %42 = vector.load %arg3[%c1_28, %c0_29, %c0_30] : memref<4x32x32xbf16, #tpu.memory_space<vmem>>, vector<1x32x32xbf16>
    %43 = vector.shape_cast %42 : vector<1x32x32xbf16> to vector<32x32xbf16>
    "tpu.trace_start"() <{level = 10 : i32, message = "btk,kd->btd"}> : () -> ()
    %cst_31 = arith.constant dense<0.000000e+00> : vector<2x8x32xf32>
    %44 = tpu.matmul %1, %43, %cst_31 {dimension_numbers = #tpu.dot_dimension_numbers<[2], [0], [0, 1], [1], [0, 0, 0, 1, 1, 1], [], []>} : vector<2x8x32xbf16>, vector<32x32xbf16>, vector<2x8x32xf32> -> vector<2x8x32xf32>
    "tpu.trace_stop"() : () -> ()
    %cst_32 = arith.constant 0.420448214 : f32
    %45 = vector.broadcast %cst_32 : f32 to vector<2x8x32xf32>
    %46 = arith.mulf %44, %45 : vector<2x8x32xf32>
    %c1_33 = arith.constant 1 : index
    %c0_34 = arith.constant 0 : index
    %c0_35 = arith.constant 0 : index
    %47 = vector.load %arg4[%c1_33, %c0_34, %c0_35] : memref<4x32x32xbf16, #tpu.memory_space<vmem>>, vector<1x32x32xbf16>
    %48 = vector.shape_cast %47 : vector<1x32x32xbf16> to vector<32x32xbf16>
    "tpu.trace_start"() <{level = 10 : i32, message = "btk,kd->btd"}> : () -> ()
    %cst_36 = arith.constant dense<0.000000e+00> : vector<2x8x32xf32>
    %49 = tpu.matmul %1, %48, %cst_36 {dimension_numbers = #tpu.dot_dimension_numbers<[2], [0], [0, 1], [1], [0, 0, 0, 1, 1, 1], [], []>} : vector<2x8x32xbf16>, vector<32x32xbf16>, vector<2x8x32xf32> -> vector<2x8x32xf32>
    "tpu.trace_stop"() : () -> ()
    %50 = arith.truncf %41 : vector<2x8x32xf32> to vector<2x8x32xbf16>
    %51 = arith.truncf %46 : vector<2x8x32xf32> to vector<2x8x32xbf16>
    "tpu.trace_start"() <{level = 10 : i32, message = "btd,bsd->bts"}> : () -> ()
    %cst_37 = arith.constant dense<0.000000e+00> : vector<2x8x8xf32>
    %52 = tpu.matmul %50, %51, %cst_37 {dimension_numbers = #tpu.dot_dimension_numbers<[2], [2], [1], [1], [0, 0, 0, 1, 1, 1], [0], [0]>} : vector<2x8x32xbf16>, vector<2x8x32xbf16>, vector<2x8x8xf32> -> vector<2x8x8xf32>
    "tpu.trace_stop"() : () -> ()
    %cst_38 = arith.constant dense<0xFF800000> : vector<2x8xf32>
    %53 = vector.multi_reduction <maximumf>, %52, %cst_38 [2] : vector<2x8x8xf32> to vector<2x8xf32>
    %54 = vector.shape_cast %53 : vector<2x8xf32> to vector<2x8x1xf32>
    %55 = vector.broadcast %54 : vector<2x8x1xf32> to vector<2x8x8xf32>
    %56 = arith.subf %52, %55 : vector<2x8x8xf32>
    %57 = math.exp %56 : vector<2x8x8xf32>
    %cst_39 = arith.constant dense<0.000000e+00> : vector<2x8xf32>
    %58 = vector.multi_reduction <add>, %57, %cst_39 [2] : vector<2x8x8xf32> to vector<2x8xf32>
    %59 = vector.shape_cast %58 : vector<2x8xf32> to vector<2x8x1xf32>
    %60 = tpu.reciprocal %59 {approx = true} : vector<2x8x1xf32> -> vector<2x8x1xf32>
    %61 = vector.broadcast %60 : vector<2x8x1xf32> to vector<2x8x8xf32>
    %62 = arith.mulf %57, %61 : vector<2x8x8xf32>
    %63 = arith.truncf %62 : vector<2x8x8xf32> to vector<2x8x8xbf16>
    %64 = arith.truncf %49 : vector<2x8x32xf32> to vector<2x8x32xbf16>
    "tpu.trace_start"() <{level = 10 : i32, message = "bts,bsd->btd"}> : () -> ()
    %cst_40 = arith.constant dense<0.000000e+00> : vector<2x8x32xf32>
    %65 = tpu.matmul %63, %64, %cst_40 {dimension_numbers = #tpu.dot_dimension_numbers<[2], [1], [1], [2], [0, 0, 0, 1, 1, 2], [0], [0]>} : vector<2x8x8xbf16>, vector<2x8x32xbf16>, vector<2x8x32xf32> -> vector<2x8x32xf32>
    "tpu.trace_stop"() : () -> ()
    %66 = arith.truncf %65 : vector<2x8x32xf32> to vector<2x8x32xbf16>
    %c1_41 = arith.constant 1 : index
    %c0_42 = arith.constant 0 : index
    %c0_43 = arith.constant 0 : index
    %67 = vector.load %arg5[%c1_41, %c0_42, %c0_43] : memref<4x32x32xbf16, #tpu.memory_space<vmem>>, vector<1x32x32xbf16>
    %68 = vector.shape_cast %67 : vector<1x32x32xbf16> to vector<32x32xbf16>
    "tpu.trace_start"() <{level = 10 : i32, message = "btd,dk->btk"}> : () -> ()
    %cst_44 = arith.constant dense<0.000000e+00> : vector<2x8x32xf32>
    %69 = tpu.matmul %66, %68, %cst_44 {dimension_numbers = #tpu.dot_dimension_numbers<[2], [0], [0, 1], [1], [0, 0, 0, 1, 1, 1], [], []>} : vector<2x8x32xbf16>, vector<32x32xbf16>, vector<2x8x32xf32> -> vector<2x8x32xf32>
    "tpu.trace_stop"() : () -> ()
    %70 = arith.addf %36, %69 : vector<2x8x32xf32>
    %c2 = arith.constant 2 : index
    %c0_45 = arith.constant 0 : index
    %c0_46 = arith.constant 0 : index
    %71 = vector.load %arg2[%c2, %c0_45, %c0_46] : memref<4x32x32xbf16, #tpu.memory_space<vmem>>, vector<1x32x32xbf16>
    %72 = vector.shape_cast %71 : vector<1x32x32xbf16> to vector<32x32xbf16>
    "tpu.trace_start"() <{level = 10 : i32, message = "btk,kd->btd"}> : () -> ()
    %cst_47 = arith.constant dense<0.000000e+00> : vector<2x8x32xf32>
    %73 = tpu.matmul %1, %72, %cst_47 {dimension_numbers = #tpu.dot_dimension_numbers<[2], [0], [0, 1], [1], [0, 0, 0, 1, 1, 1], [], []>} : vector<2x8x32xbf16>, vector<32x32xbf16>, vector<2x8x32xf32> -> vector<2x8x32xf32>
    "tpu.trace_stop"() : () -> ()
    %cst_48 = arith.constant 0.420448214 : f32
    %74 = vector.broadcast %cst_48 : f32 to vector<2x8x32xf32>
    %75 = arith.mulf %73, %74 : vector<2x8x32xf32>
    %c2_49 = arith.constant 2 : index
    %c0_50 = arith.constant 0 : index
    %c0_51 = arith.constant 0 : index
    %76 = vector.load %arg3[%c2_49, %c0_50, %c0_51] : memref<4x32x32xbf16, #tpu.memory_space<vmem>>, vector<1x32x32xbf16>
    %77 = vector.shape_cast %76 : vector<1x32x32xbf16> to vector<32x32xbf16>
    "tpu.trace_start"() <{level = 10 : i32, message = "btk,kd->btd"}> : () -> ()
    %cst_52 = arith.constant dense<0.000000e+00> : vector<2x8x32xf32>
    %78 = tpu.matmul %1, %77, %cst_52 {dimension_numbers = #tpu.dot_dimension_numbers<[2], [0], [0, 1], [1], [0, 0, 0, 1, 1, 1], [], []>} : vector<2x8x32xbf16>, vector<32x32xbf16>, vector<2x8x32xf32> -> vector<2x8x32xf32>
    "tpu.trace_stop"() : () -> ()
    %cst_53 = arith.constant 0.420448214 : f32
    %79 = vector.broadcast %cst_53 : f32 to vector<2x8x32xf32>
    %80 = arith.mulf %78, %79 : vector<2x8x32xf32>
    %c2_54 = arith.constant 2 : index
    %c0_55 = arith.constant 0 : index
    %c0_56 = arith.constant 0 : index
    %81 = vector.load %arg4[%c2_54, %c0_55, %c0_56] : memref<4x32x32xbf16, #tpu.memory_space<vmem>>, vector<1x32x32xbf16>
    %82 = vector.shape_cast %81 : vector<1x32x32xbf16> to vector<32x32xbf16>
    "tpu.trace_start"() <{level = 10 : i32, message = "btk,kd->btd"}> : () -> ()
    %cst_57 = arith.constant dense<0.000000e+00> : vector<2x8x32xf32>
    %83 = tpu.matmul %1, %82, %cst_57 {dimension_numbers = #tpu.dot_dimension_numbers<[2], [0], [0, 1], [1], [0, 0, 0, 1, 1, 1], [], []>} : vector<2x8x32xbf16>, vector<32x32xbf16>, vector<2x8x32xf32> -> vector<2x8x32xf32>
    "tpu.trace_stop"() : () -> ()
    %84 = arith.truncf %75 : vector<2x8x32xf32> to vector<2x8x32xbf16>
    %85 = arith.truncf %80 : vector<2x8x32xf32> to vector<2x8x32xbf16>
    "tpu.trace_start"() <{level = 10 : i32, message = "btd,bsd->bts"}> : () -> ()
    %cst_58 = arith.constant dense<0.000000e+00> : vector<2x8x8xf32>
    %86 = tpu.matmul %84, %85, %cst_58 {dimension_numbers = #tpu.dot_dimension_numbers<[2], [2], [1], [1], [0, 0, 0, 1, 1, 1], [0], [0]>} : vector<2x8x32xbf16>, vector<2x8x32xbf16>, vector<2x8x8xf32> -> vector<2x8x8xf32>
    "tpu.trace_stop"() : () -> ()
    %cst_59 = arith.constant dense<0xFF800000> : vector<2x8xf32>
    %87 = vector.multi_reduction <maximumf>, %86, %cst_59 [2] : vector<2x8x8xf32> to vector<2x8xf32>
    %88 = vector.shape_cast %87 : vector<2x8xf32> to vector<2x8x1xf32>
    %89 = vector.broadcast %88 : vector<2x8x1xf32> to vector<2x8x8xf32>
    %90 = arith.subf %86, %89 : vector<2x8x8xf32>
    %91 = math.exp %90 : vector<2x8x8xf32>
    %cst_60 = arith.constant dense<0.000000e+00> : vector<2x8xf32>
    %92 = vector.multi_reduction <add>, %91, %cst_60 [2] : vector<2x8x8xf32> to vector<2x8xf32>
    %93 = vector.shape_cast %92 : vector<2x8xf32> to vector<2x8x1xf32>
    %94 = tpu.reciprocal %93 {approx = true} : vector<2x8x1xf32> -> vector<2x8x1xf32>
    %95 = vector.broadcast %94 : vector<2x8x1xf32> to vector<2x8x8xf32>
    %96 = arith.mulf %91, %95 : vector<2x8x8xf32>
    %97 = arith.truncf %96 : vector<2x8x8xf32> to vector<2x8x8xbf16>
    %98 = arith.truncf %83 : vector<2x8x32xf32> to vector<2x8x32xbf16>
    "tpu.trace_start"() <{level = 10 : i32, message = "bts,bsd->btd"}> : () -> ()
    %cst_61 = arith.constant dense<0.000000e+00> : vector<2x8x32xf32>
    %99 = tpu.matmul %97, %98, %cst_61 {dimension_numbers = #tpu.dot_dimension_numbers<[2], [1], [1], [2], [0, 0, 0, 1, 1, 2], [0], [0]>} : vector<2x8x8xbf16>, vector<2x8x32xbf16>, vector<2x8x32xf32> -> vector<2x8x32xf32>
    "tpu.trace_stop"() : () -> ()
    %100 = arith.truncf %99 : vector<2x8x32xf32> to vector<2x8x32xbf16>
    %c2_62 = arith.constant 2 : index
    %c0_63 = arith.constant 0 : index
    %c0_64 = arith.constant 0 : index
    %101 = vector.load %arg5[%c2_62, %c0_63, %c0_64] : memref<4x32x32xbf16, #tpu.memory_space<vmem>>, vector<1x32x32xbf16>
    %102 = vector.shape_cast %101 : vector<1x32x32xbf16> to vector<32x32xbf16>
    "tpu.trace_start"() <{level = 10 : i32, message = "btd,dk->btk"}> : () -> ()
    %cst_65 = arith.constant dense<0.000000e+00> : vector<2x8x32xf32>
    %103 = tpu.matmul %100, %102, %cst_65 {dimension_numbers = #tpu.dot_dimension_numbers<[2], [0], [0, 1], [1], [0, 0, 0, 1, 1, 1], [], []>} : vector<2x8x32xbf16>, vector<32x32xbf16>, vector<2x8x32xf32> -> vector<2x8x32xf32>
    "tpu.trace_stop"() : () -> ()
    %104 = arith.addf %70, %103 : vector<2x8x32xf32>
    %c3 = arith.constant 3 : index
    %c0_66 = arith.constant 0 : index
    %c0_67 = arith.constant 0 : index
    %105 = vector.load %arg2[%c3, %c0_66, %c0_67] : memref<4x32x32xbf16, #tpu.memory_space<vmem>>, vector<1x32x32xbf16>
    %106 = vector.shape_cast %105 : vector<1x32x32xbf16> to vector<32x32xbf16>
    "tpu.trace_start"() <{level = 10 : i32, message = "btk,kd->btd"}> : () -> ()
    %cst_68 = arith.constant dense<0.000000e+00> : vector<2x8x32xf32>
    %107 = tpu.matmul %1, %106, %cst_68 {dimension_numbers = #tpu.dot_dimension_numbers<[2], [0], [0, 1], [1], [0, 0, 0, 1, 1, 1], [], []>} : vector<2x8x32xbf16>, vector<32x32xbf16>, vector<2x8x32xf32> -> vector<2x8x32xf32>
    "tpu.trace_stop"() : () -> ()
    %cst_69 = arith.constant 0.420448214 : f32
    %108 = vector.broadcast %cst_69 : f32 to vector<2x8x32xf32>
    %109 = arith.mulf %107, %108 : vector<2x8x32xf32>
    %c3_70 = arith.constant 3 : index
    %c0_71 = arith.constant 0 : index
    %c0_72 = arith.constant 0 : index
    %110 = vector.load %arg3[%c3_70, %c0_71, %c0_72] : memref<4x32x32xbf16, #tpu.memory_space<vmem>>, vector<1x32x32xbf16>
    %111 = vector.shape_cast %110 : vector<1x32x32xbf16> to vector<32x32xbf16>
    "tpu.trace_start"() <{level = 10 : i32, message = "btk,kd->btd"}> : () -> ()
    %cst_73 = arith.constant dense<0.000000e+00> : vector<2x8x32xf32>
    %112 = tpu.matmul %1, %111, %cst_73 {dimension_numbers = #tpu.dot_dimension_numbers<[2], [0], [0, 1], [1], [0, 0, 0, 1, 1, 1], [], []>} : vector<2x8x32xbf16>, vector<32x32xbf16>, vector<2x8x32xf32> -> vector<2x8x32xf32>
    "tpu.trace_stop"() : () -> ()
    %cst_74 = arith.constant 0.420448214 : f32
    %113 = vector.broadcast %cst_74 : f32 to vector<2x8x32xf32>
    %114 = arith.mulf %112, %113 : vector<2x8x32xf32>
    %c3_75 = arith.constant 3 : index
    %c0_76 = arith.constant 0 : index
    %c0_77 = arith.constant 0 : index
    %115 = vector.load %arg4[%c3_75, %c0_76, %c0_77] : memref<4x32x32xbf16, #tpu.memory_space<vmem>>, vector<1x32x32xbf16>
    %116 = vector.shape_cast %115 : vector<1x32x32xbf16> to vector<32x32xbf16>
    "tpu.trace_start"() <{level = 10 : i32, message = "btk,kd->btd"}> : () -> ()
    %cst_78 = arith.constant dense<0.000000e+00> : vector<2x8x32xf32>
    %117 = tpu.matmul %1, %116, %cst_78 {dimension_numbers = #tpu.dot_dimension_numbers<[2], [0], [0, 1], [1], [0, 0, 0, 1, 1, 1], [], []>} : vector<2x8x32xbf16>, vector<32x32xbf16>, vector<2x8x32xf32> -> vector<2x8x32xf32>
    "tpu.trace_stop"() : () -> ()
    %118 = arith.truncf %109 : vector<2x8x32xf32> to vector<2x8x32xbf16>
    %119 = arith.truncf %114 : vector<2x8x32xf32> to vector<2x8x32xbf16>
    "tpu.trace_start"() <{level = 10 : i32, message = "btd,bsd->bts"}> : () -> ()
    %cst_79 = arith.constant dense<0.000000e+00> : vector<2x8x8xf32>
    %120 = tpu.matmul %118, %119, %cst_79 {dimension_numbers = #tpu.dot_dimension_numbers<[2], [2], [1], [1], [0, 0, 0, 1, 1, 1], [0], [0]>} : vector<2x8x32xbf16>, vector<2x8x32xbf16>, vector<2x8x8xf32> -> vector<2x8x8xf32>
    "tpu.trace_stop"() : () -> ()
    %cst_80 = arith.constant dense<0xFF800000> : vector<2x8xf32>
    %121 = vector.multi_reduction <maximumf>, %120, %cst_80 [2] : vector<2x8x8xf32> to vector<2x8xf32>
    %122 = vector.shape_cast %121 : vector<2x8xf32> to vector<2x8x1xf32>
    %123 = vector.broadcast %122 : vector<2x8x1xf32> to vector<2x8x8xf32>
    %124 = arith.subf %120, %123 : vector<2x8x8xf32>
    %125 = math.exp %124 : vector<2x8x8xf32>
    %cst_81 = arith.constant dense<0.000000e+00> : vector<2x8xf32>
    %126 = vector.multi_reduction <add>, %125, %cst_81 [2] : vector<2x8x8xf32> to vector<2x8xf32>
    %127 = vector.shape_cast %126 : vector<2x8xf32> to vector<2x8x1xf32>
    %128 = tpu.reciprocal %127 {approx = true} : vector<2x8x1xf32> -> vector<2x8x1xf32>
    %129 = vector.broadcast %128 : vector<2x8x1xf32> to vector<2x8x8xf32>
    %130 = arith.mulf %125, %129 : vector<2x8x8xf32>
    %131 = arith.truncf %130 : vector<2x8x8xf32> to vector<2x8x8xbf16>
    %132 = arith.truncf %117 : vector<2x8x32xf32> to vector<2x8x32xbf16>
    "tpu.trace_start"() <{level = 10 : i32, message = "bts,bsd->btd"}> : () -> ()
    %cst_82 = arith.constant dense<0.000000e+00> : vector<2x8x32xf32>
    %133 = tpu.matmul %131, %132, %cst_82 {dimension_numbers = #tpu.dot_dimension_numbers<[2], [1], [1], [2], [0, 0, 0, 1, 1, 2], [0], [0]>} : vector<2x8x8xbf16>, vector<2x8x32xbf16>, vector<2x8x32xf32> -> vector<2x8x32xf32>
    "tpu.trace_stop"() : () -> ()
    %134 = arith.truncf %133 : vector<2x8x32xf32> to vector<2x8x32xbf16>
    %c3_83 = arith.constant 3 : index
    %c0_84 = arith.constant 0 : index
    %c0_85 = arith.constant 0 : index
    %135 = vector.load %arg5[%c3_83, %c0_84, %c0_85] : memref<4x32x32xbf16, #tpu.memory_space<vmem>>, vector<1x32x32xbf16>
    %136 = vector.shape_cast %135 : vector<1x32x32xbf16> to vector<32x32xbf16>
    "tpu.trace_start"() <{level = 10 : i32, message = "btd,dk->btk"}> : () -> ()
    %cst_86 = arith.constant dense<0.000000e+00> : vector<2x8x32xf32>
    %137 = tpu.matmul %134, %136, %cst_86 {dimension_numbers = #tpu.dot_dimension_numbers<[2], [0], [0, 1], [1], [0, 0, 0, 1, 1, 1], [], []>} : vector<2x8x32xbf16>, vector<32x32xbf16>, vector<2x8x32xf32> -> vector<2x8x32xf32>
    "tpu.trace_stop"() : () -> ()
    %138 = arith.addf %104, %137 : vector<2x8x32xf32>
    %c0_87 = arith.constant 0 : index
    %c0_88 = arith.constant 0 : index
    %139 = vector.load %arg6[%c0_87, %c0_88] : memref<1x32xf32, #tpu.memory_space<vmem>>, vector<1x32xf32>
    %140 = vector.shape_cast %139 : vector<1x32xf32> to vector<32xf32>
    %141 = vector.shape_cast %140 : vector<32xf32> to vector<1x1x32xf32>
    %142 = vector.broadcast %141 : vector<1x1x32xf32> to vector<2x8x32xf32>
    %143 = arith.addf %138, %142 : vector<2x8x32xf32>
    %144 = arith.addf %143, %0 : vector<2x8x32xf32>
    %c0_89 = arith.constant 0 : index
    %c0_90 = arith.constant 0 : index
    %145 = vector.load %arg7[%c0_89, %c0_90] : memref<1x32xf32, #tpu.memory_space<vmem>>, vector<1x32xf32>
    %146 = vector.shape_cast %145 : vector<1x32xf32> to vector<32xf32>
    %c0_91 = arith.constant 0 : index
    %c0_92 = arith.constant 0 : index
    %147 = vector.load %arg8[%c0_91, %c0_92] : memref<1x32xf32, #tpu.memory_space<vmem>>, vector<1x32xf32>
    %148 = vector.shape_cast %147 : vector<1x32xf32> to vector<32xf32>
    %cst_93 = arith.constant dense<0.000000e+00> : vector<2x8xf32>
    %149 = vector.multi_reduction <add>, %144, %cst_93 [2] : vector<2x8x32xf32> to vector<2x8xf32>
    %150 = vector.shape_cast %149 : vector<2x8xf32> to vector<2x8x1xf32>
    %cst_94 = arith.constant 3.200000e+01 : f32
    %151 = vector.broadcast %cst_94 : f32 to vector<2x8x1xf32>
    %152 = arith.divf %150, %151 : vector<2x8x1xf32>
    %153 = vector.broadcast %152 : vector<2x8x1xf32> to vector<2x8x32xf32>
    %154 = arith.subf %144, %153 : vector<2x8x32xf32>
    %155 = arith.mulf %154, %154 : vector<2x8x32xf32>
    %cst_95 = arith.constant dense<0.000000e+00> : vector<2x8xf32>
    %156 = vector.multi_reduction <add>, %155, %cst_95 [2] : vector<2x8x32xf32> to vector<2x8xf32>
    %157 = vector.shape_cast %156 : vector<2x8xf32> to vector<2x8x1xf32>
    %cst_96 = arith.constant 3.200000e+01 : f32
    %158 = vector.broadcast %cst_96 : f32 to vector<2x8x1xf32>
    %159 = arith.divf %157, %158 : vector<2x8x1xf32>
    %160 = vector.broadcast %152 : vector<2x8x1xf32> to vector<2x8x32xf32>
    %161 = arith.subf %144, %160 : vector<2x8x32xf32>
    %cst_97 = arith.constant 9.99999974E-6 : f32
    %162 = vector.broadcast %cst_97 : f32 to vector<2x8x1xf32>
    %163 = arith.addf %159, %162 : vector<2x8x1xf32>
    %164 = math.rsqrt %163 : vector<2x8x1xf32>
    %165 = vector.broadcast %164 : vector<2x8x1xf32> to vector<2x8x32xf32>
    %166 = arith.mulf %161, %165 : vector<2x8x32xf32>
    %167 = vector.shape_cast %146 : vector<32xf32> to vector<1x1x32xf32>
    %168 = vector.broadcast %167 : vector<1x1x32xf32> to vector<2x8x32xf32>
    %169 = arith.mulf %166, %168 : vector<2x8x32xf32>
    %170 = vector.shape_cast %148 : vector<32xf32> to vector<1x1x32xf32>
    %171 = vector.broadcast %170 : vector<1x1x32xf32> to vector<2x8x32xf32>
    %172 = arith.addf %169, %171 : vector<2x8x32xf32>
    %173 = arith.truncf %172 : vector<2x8x32xf32> to vector<2x8x32xbf16>
    %c0_98 = arith.constant 0 : index
    %c0_99 = arith.constant 0 : index
    %174 = vector.load %arg9[%c0_98, %c0_99] : memref<32x128xbf16, #tpu.memory_space<vmem>>, vector<32x128xbf16>
    "tpu.trace_start"() <{level = 10 : i32, message = "btk,kn->btn"}> : () -> ()
    %cst_100 = arith.constant dense<0.000000e+00> : vector<2x8x128xf32>
    %175 = tpu.matmul %173, %174, %cst_100 {dimension_numbers = #tpu.dot_dimension_numbers<[2], [0], [0, 1], [1], [0, 0, 0, 1, 1, 1], [], []>} : vector<2x8x32xbf16>, vector<32x128xbf16>, vector<2x8x128xf32> -> vector<2x8x128xf32>
    "tpu.trace_stop"() : () -> ()
    %c0_101 = arith.constant 0 : index
    %c0_102 = arith.constant 0 : index
    %176 = vector.load %arg10[%c0_101, %c0_102] : memref<1x128xf32, #tpu.memory_space<vmem>>, vector<1x128xf32>
    %177 = vector.shape_cast %176 : vector<1x128xf32> to vector<128xf32>
    %178 = vector.shape_cast %177 : vector<128xf32> to vector<1x1x128xf32>
    %179 = vector.broadcast %178 : vector<1x1x128xf32> to vector<2x8x128xf32>
    %180 = arith.addf %175, %179 : vector<2x8x128xf32>
    %cst_103 = arith.constant 0.000000e+00 : f32
    %181 = vector.broadcast %cst_103 : f32 to vector<2x8x128xf32>
    %182 = arith.maximumf %180, %181 : vector<2x8x128xf32>
    %183 = arith.truncf %182 : vector<2x8x128xf32> to vector<2x8x128xbf16>
    %c0_104 = arith.constant 0 : index
    %c0_105 = arith.constant 0 : index
    %184 = vector.load %arg11[%c0_104, %c0_105] : memref<128x32xbf16, #tpu.memory_space<vmem>>, vector<128x32xbf16>
    "tpu.trace_start"() <{level = 10 : i32, message = "btn,nk->btk"}> : () -> ()
    %cst_106 = arith.constant dense<0.000000e+00> : vector<2x8x32xf32>
    %185 = tpu.matmul %183, %184, %cst_106 {dimension_numbers = #tpu.dot_dimension_numbers<[2], [0], [0, 1], [1], [0, 0, 0, 1, 1, 1], [], []>} : vector<2x8x128xbf16>, vector<128x32xbf16>, vector<2x8x32xf32> -> vector<2x8x32xf32>
    "tpu.trace_stop"() : () -> ()
    %c0_107 = arith.constant 0 : index
    %c0_108 = arith.constant 0 : index
    %186 = vector.load %arg12[%c0_107, %c0_108] : memref<1x32xf32, #tpu.memory_space<vmem>>, vector<1x32xf32>
    %187 = vector.shape_cast %186 : vector<1x32xf32> to vector<32xf32>
    %188 = vector.shape_cast %187 : vector<32xf32> to vector<1x1x32xf32>
    %189 = vector.broadcast %188 : vector<1x1x32xf32> to vector<2x8x32xf32>
    %190 = arith.addf %185, %189 : vector<2x8x32xf32>
    %191 = arith.addf %190, %172 : vector<2x8x32xf32>
    %c0_109 = arith.constant 0 : index
    %c0_110 = arith.constant 0 : index
    %192 = vector.load %arg13[%c0_109, %c0_110] : memref<1x32xf32, #tpu.memory_space<vmem>>, vector<1x32xf32>
    %193 = vector.shape_cast %192 : vector<1x32xf32> to vector<32xf32>
    %c0_111 = arith.constant 0 : index
    %c0_112 = arith.constant 0 : index
    %194 = vector.load %arg14[%c0_111, %c0_112] : memref<1x32xf32, #tpu.memory_space<vmem>>, vector<1x32xf32>
    %195 = vector.shape_cast %194 : vector<1x32xf32> to vector<32xf32>
    %cst_113 = arith.constant dense<0.000000e+00> : vector<2x8xf32>
    %196 = vector.multi_reduction <add>, %191, %cst_113 [2] : vector<2x8x32xf32> to vector<2x8xf32>
    %197 = vector.shape_cast %196 : vector<2x8xf32> to vector<2x8x1xf32>
    %cst_114 = arith.constant 3.200000e+01 : f32
    %198 = vector.broadcast %cst_114 : f32 to vector<2x8x1xf32>
    %199 = arith.divf %197, %198 : vector<2x8x1xf32>
    %200 = vector.broadcast %199 : vector<2x8x1xf32> to vector<2x8x32xf32>
    %201 = arith.subf %191, %200 : vector<2x8x32xf32>
    %202 = arith.mulf %201, %201 : vector<2x8x32xf32>
    %cst_115 = arith.constant dense<0.000000e+00> : vector<2x8xf32>
    %203 = vector.multi_reduction <add>, %202, %cst_115 [2] : vector<2x8x32xf32> to vector<2x8xf32>
    %204 = vector.shape_cast %203 : vector<2x8xf32> to vector<2x8x1xf32>
    %cst_116 = arith.constant 3.200000e+01 : f32
    %205 = vector.broadcast %cst_116 : f32 to vector<2x8x1xf32>
    %206 = arith.divf %204, %205 : vector<2x8x1xf32>
    %207 = vector.broadcast %199 : vector<2x8x1xf32> to vector<2x8x32xf32>
    %208 = arith.subf %191, %207 : vector<2x8x32xf32>
    %cst_117 = arith.constant 9.99999974E-6 : f32
    %209 = vector.broadcast %cst_117 : f32 to vector<2x8x1xf32>
    %210 = arith.addf %206, %209 : vector<2x8x1xf32>
    %211 = math.rsqrt %210 : vector<2x8x1xf32>
    %212 = vector.broadcast %211 : vector<2x8x1xf32> to vector<2x8x32xf32>
    %213 = arith.mulf %208, %212 : vector<2x8x32xf32>
    %214 = vector.shape_cast %193 : vector<32xf32> to vector<1x1x32xf32>
    %215 = vector.broadcast %214 : vector<1x1x32xf32> to vector<2x8x32xf32>
    %216 = arith.mulf %213, %215 : vector<2x8x32xf32>
    %217 = vector.shape_cast %195 : vector<32xf32> to vector<1x1x32xf32>
    %218 = vector.broadcast %217 : vector<1x1x32xf32> to vector<2x8x32xf32>
    %219 = arith.addf %216, %218 : vector<2x8x32xf32>
    %c0_118 = arith.constant 0 : index
    %c0_119 = arith.constant 0 : index
    %c0_120 = arith.constant 0 : index
    %220 = vector.load %arg15[%c0_118, %c0_119, %c0_120] : memref<2x8x32xf32, #tpu.memory_space<vmem>>, vector<2x8x32xf32>
    tpu.vector_store %arg15[%c0_118, %c0_119, %c0_120], %219 {strides = array<i32>} : memref<2x8x32xf32, #tpu.memory_space<vmem>>, vector<2x8x32xf32>,
    return
  }
  func.func @transform_0(%arg0: i32) -> (i32, i32, i32) {
    %c0_i32 = arith.constant 0 : i32
    %c0_i32_0 = arith.constant 0 : i32
    %c0_i32_1 = arith.constant 0 : i32
    return %arg0, %c0_i32, %c0_i32_0 : i32, i32, i32
  }
  func.func @transform_1(%arg0: i32) -> (i32, i32, i32) {
    %c0_i32 = arith.constant 0 : i32
    %c0_i32_0 = arith.constant 0 : i32
    %c0_i32_1 = arith.constant 0 : i32
    %c0_i32_2 = arith.constant 0 : i32
    return %c0_i32, %c0_i32_0, %c0_i32_1 : i32, i32, i32
  }
  func.func @transform_2(%arg0: i32) -> (i32, i32, i32) {
    %c0_i32 = arith.constant 0 : i32
    %c0_i32_0 = arith.constant 0 : i32
    %c0_i32_1 = arith.constant 0 : i32
    %c0_i32_2 = arith.constant 0 : i32
    return %c0_i32, %c0_i32_0, %c0_i32_1 : i32, i32, i32
  }
  func.func @transform_3(%arg0: i32) -> (i32, i32, i32) {
    %c0_i32 = arith.constant 0 : i32
    %c0_i32_0 = arith.constant 0 : i32
    %c0_i32_1 = arith.constant 0 : i32
    %c0_i32_2 = arith.constant 0 : i32
    return %c0_i32, %c0_i32_0, %c0_i32_1 : i32, i32, i32
  }
  func.func @transform_4(%arg0: i32) -> (i32, i32, i32) {
    %c0_i32 = arith.constant 0 : i32
    %c0_i32_0 = arith.constant 0 : i32
    %c0_i32_1 = arith.constant 0 : i32
    %c0_i32_2 = arith.constant 0 : i32
    return %c0_i32, %c0_i32_0, %c0_i32_1 : i32, i32, i32
  }
  func.func @transform_5(%arg0: i32) -> (i32, i32) {
    %c0_i32 = arith.constant 0 : i32
    %c0_i32_0 = arith.constant 0 : i32
    %c0_i32_1 = arith.constant 0 : i32
    return %c0_i32, %c0_i32_0 : i32, i32
  }
  func.func @transform_6(%arg0: i32) -> (i32, i32) {
    %c0_i32 = arith.constant 0 : i32
    %c0_i32_0 = arith.constant 0 : i32
    %c0_i32_1 = arith.constant 0 : i32
    return %c0_i32, %c0_i32_0 : i32, i32
  }
  func.func @transform_7(%arg0: i32) -> (i32, i32) {
    %c0_i32 = arith.constant 0 : i32
    %c0_i32_0 = arith.constant 0 : i32
    %c0_i32_1 = arith.constant 0 : i32
    return %c0_i32, %c0_i32_0 : i32, i32
  }
  func.func @transform_8(%arg0: i32) -> (i32, i32) {
    %c0_i32 = arith.constant 0 : i32
    %c0_i32_0 = arith.constant 0 : i32
    %c0_i32_1 = arith.constant 0 : i32
    return %c0_i32, %c0_i32_0 : i32, i32
  }
  func.func @transform_9(%arg0: i32) -> (i32, i32) {
    %c0_i32 = arith.constant 0 : i32
    %c0_i32_0 = arith.constant 0 : i32
    %c0_i32_1 = arith.constant 0 : i32
    return %c0_i32, %c0_i32_0 : i32, i32
  }
  func.func @transform_10(%arg0: i32) -> (i32, i32) {
    %c0_i32 = arith.constant 0 : i32
    %c0_i32_0 = arith.constant 0 : i32
    %c0_i32_1 = arith.constant 0 : i32
    return %c0_i32, %c0_i32_0 : i32, i32
  }
  func.func @transform_11(%arg0: i32) -> (i32, i32) {
    %c0_i32 = arith.constant 0 : i32
    %c0_i32_0 = arith.constant 0 : i32
    %c0_i32_1 = arith.constant 0 : i32
    return %c0_i32, %c0_i32_0 : i32, i32
  }
  func.func @transform_12(%arg0: i32) -> (i32, i32) {
    %c0_i32 = arith.constant 0 : i32
    %c0_i32_0 = arith.constant 0 : i32
    %c0_i32_1 = arith.constant 0 : i32
    return %c0_i32, %c0_i32_0 : i32, i32
  }
  func.func @transform_13(%arg0: i32) -> (i32, i32) {
    %c0_i32 = arith.constant 0 : i32
    %c0_i32_0 = arith.constant 0 : i32
    %c0_i32_1 = arith.constant 0 : i32
    return %c0_i32, %c0_i32_0 : i32, i32
  }
  func.func @transform_14(%arg0: i32) -> (i32, i32, i32) {
    %c0_i32 = arith.constant 0 : i32
    %c0_i32_0 = arith.constant 0 : i32
    %c0_i32_1 = arith.constant 0 : i32
    return %arg0, %c0_i32, %c0_i32_0 : i32, i32, i32
  }
}

</mosaic_0001>

<bundles_post_ra>
// kernel: tpu_custom_call.1
= control target key start
LH: loop header
LB: loop body
LE: loop exit
PB: predicated region body
PF: predicated region fallthrough
CT: control target
= control target key end

     0   :  { %19 = vsyncpa [#allocation3], 0  ;;  %s3432_s0 = inlined_call_operand.vmem [shape: f32[2,8,32], index: 0, kind: input, shape index: {}]   ;;  %s3433_s1 = inlined_call_operand.vmem [shape: bf16[4,32,32], index: 1, kind: input, shape index: {}]   ;;  %s3434_s2 = inlined_call_operand.hbm [shape: bf16[4,32,32], index: 2, kind: input, shape index: {}]   ;;  %s3435_s3 = inlined_call_operand.hbm [shape: bf16[4,32,32], index: 3, kind: input, shape index: {}]   ;;  %s3436_s4 = inlined_call_operand.hbm [shape: bf16[4,32,32], index: 4, kind: input, shape index: {}]   ;;  %s3437_s5 = inlined_call_operand.vmem [shape: f32[1,32], index: 5, kind: input, shape index: {}]   ;;  %s3438_s6 = inlined_call_operand.vmem [shape: f32[1,32], index: 6, kind: input, shape index: {}]   ;;  %s3439_s7 = inlined_call_operand.vmem [shape: f32[1,32], index: 7, kind: input, shape index: {}]   ;;  %s3440_s8 = inlined_call_operand.hbm [shape: bf16[32,128], index: 8, kind: input, shape index: {}]   ;;  %s3441_s9 = inlined_call_operand.vmem [shape: f32[1,128], index: 9, kind: input, shape index: {}]   ;;  %s3442_s10 = inlined_call_operand.vmem [shape: bf16[128,32], index: 10, kind: input, shape index: {}]   ;;  %s3443_s11 = inlined_call_operand.vmem [shape: f32[1,32], index: 11, kind: input, shape index: {}]   ;;  %s3444_s12 = inlined_call_operand.vmem [shape: f32[1,32], index: 12, kind: input, shape index: {}]   ;;  %s3445_s13 = inlined_call_operand.vmem [shape: f32[1,32], index: 13, kind: input, shape index: {}]   ;;  %s3446_s14 = inlined_call_operand.hbm [shape: f32[2,8,32], index: 14, kind: output, shape index: {}]  }
   0x1   :  { %20 = vsyncpa [#allocation6], 0 }
   0x2   :  { %21 = vsyncpa [#allocation9], 0 }
   0x3   :  { %22 = vsyncpa [#allocation4], 0  ;;  %s2943_s29 = smov [#allocation5]   ;;  %s2944_s15 = smov [#allocation2]  }
   0x4   :  { %s44_s30 = sshll.u32 %s2943_s29, 4  ;;  %s32_s16 = sshll.u32 %s2944_s15, 4  ;;  %s45_s30 = int_to_ptr.vmem [resolvable:$true] %s44_s30  ;;  %s3029_s16 = int_to_ptr.vmem [resolvable:$true] %s32_s16 }
   0x5   :  { %s2825_s19 = scalar_lea.hbm %s3435_s3, 1024 }
   0x6   :  { %p2826_p0 = scmp.ne.s32.totalorder %s3435_s3, %s2825_s19  ;;  %p2829_p1 = scmp.lt.u32.totalorder %s2825_s19, %s3435_s3 }
   0x8   :  { %p2831_p2 = pnand %p2829_p1, %p2826_p0 }
   0xa   :  { %2834 = shalt.err (!%p2831_p2)
}
   0xb   :  { %s2835_s24 = scalar_lea.vmem %s45_s30, 1024  ;;  %p2840_p4 = scmp.lt.s32.totalorder %s45_s30, %s45_s30 }
   0xc   :  { %p2836_p3 = scmp.ne.s32.totalorder %s45_s30, %s2835_s24  ;;  %p2841_p5 = scmp.lt.s32.totalorder %s2835_s24, %s2835_s24 }
   0xe   :  { %p2842_p6 = por %p2841_p5, %p2840_p4 }
  0x10   :  { %p2843_p7 = pnand %p2842_p6, %p2836_p3 }
  0x12   :  { %2846 = shalt.err (!%p2843_p7)
}
  0x13   :  { %s2945_s25 = smov 64   ;;  %s2946_s26 = smov 4  }
  0x14   :  { %50 = dma.hbm_to_vmem [thread:$0]  %s3435_s3, 1024, %s45_s30, [#allocation6], %s2945_s25, %s2945_s25, %s2946_s26  }
  0x15   :  { %s2847_s17 = scalar_lea.hbm %s3434_s2, 1024 }
  0x16   :  { %p2848_p8 = scmp.ne.s32.totalorder %s3434_s2, %s2847_s17  ;;  %p2851_p9 = scmp.lt.u32.totalorder %s2847_s17, %s3434_s2 }
  0x18   :  { %p2853_p10 = pnand %p2851_p9, %p2848_p8 }
  0x1a   :  { %2856 = shalt.err (!%p2853_p10)
}
  0x1b   :  { %s2857_s22 = scalar_lea.vmem %s3029_s16, 1024  ;;  %p2862_p12 = scmp.lt.s32.totalorder %s3029_s16, %s3029_s16 }
  0x1c   :  { %p2858_p11 = scmp.ne.s32.totalorder %s3029_s16, %s2857_s22  ;;  %p2863_p13 = scmp.lt.s32.totalorder %s2857_s22, %s2857_s22 }
  0x1e   :  { %p2864_p0 = por %p2863_p13, %p2862_p12 }
  0x20   :  { %p2865_p1 = pnand %p2864_p0, %p2858_p11 }
  0x22   :  { %2868 = shalt.err (!%p2865_p1)
}
  0x23   :  { %38 = dma.hbm_to_vmem [thread:$0]  %s3434_s2, 1024, %s3029_s16, [#allocation3], %s2945_s25, %s2945_s25, %s2946_s26  }
  0x24   :  { %s2947_s23 = smov [#allocation7]   ;;  %s2948_s27 = smov [#allocation8]  }
  0x25   :  { %s56_s24 = sshll.u32 %s2947_s23, 4  ;;  %s74_s28 = sshll.u32 %s2948_s27, 4  ;;  %s57_s24 = int_to_ptr.vmem [resolvable:$true] %s56_s24  ;;  %s3066_s28 = int_to_ptr.vmem [resolvable:$true] %s74_s28 }
  0x26   :  { %s2869_s17 = scalar_lea.hbm %s3436_s4, 1024 }
  0x27   :  { %p2870_p2 = scmp.ne.s32.totalorder %s3436_s4, %s2869_s17  ;;  %p2873_p3 = scmp.lt.u32.totalorder %s2869_s17, %s3436_s4 }
  0x29   :  { %p2875_p4 = pnand %p2873_p3, %p2870_p2 }
  0x2b   :  { %2878 = shalt.err (!%p2875_p4)
}
  0x2c   :  { %s2879_s2 = scalar_lea.vmem %s57_s24, 1024  ;;  %p2884_p6 = scmp.lt.s32.totalorder %s57_s24, %s57_s24 }
  0x2d   :  { %p2880_p5 = scmp.ne.s32.totalorder %s57_s24, %s2879_s2  ;;  %p2885_p7 = scmp.lt.s32.totalorder %s2879_s2, %s2879_s2 }
  0x2f   :  { %p2886_p8 = por %p2885_p7, %p2884_p6 }
  0x31   :  { %p2887_p9 = pnand %p2886_p8, %p2880_p5 }
  0x33   :  { %2890 = shalt.err (!%p2887_p9)
}
  0x34   :  { %62 = dma.hbm_to_vmem [thread:$0]  %s3436_s4, 1024, %s57_s24, [#allocation6], %s2945_s25, %s2945_s25, %s2946_s26  }
  0x35   :  { %s2891_s23 = scalar_lea.hbm %s3440_s8, 256 }
  0x36   :  { %p2892_p10 = scmp.ne.s32.totalorder %s3440_s8, %s2891_s23  ;;  %p2895_p11 = scmp.lt.u32.totalorder %s2891_s23, %s3440_s8 }
  0x38   :  { %p2897_p12 = pnand %p2895_p11, %p2892_p10 }
  0x3a   :  { %2900 = shalt.err (!%p2897_p12)
}
  0x3b   :  { %s2901_s18 = scalar_lea.vmem %s3066_s28, 256  ;;  %p2906_p0 = scmp.lt.s32.totalorder %s3066_s28, %s3066_s28 }
  0x3c   :  { %p2902_p13 = scmp.ne.s32.totalorder %s3066_s28, %s2901_s18  ;;  %p2907_p1 = scmp.lt.s32.totalorder %s2901_s18, %s2901_s18 }
  0x3e   :  { %p2908_p2 = por %p2907_p1, %p2906_p0 }
  0x40   :  { %p2909_p3 = pnand %p2908_p2, %p2902_p13 }
  0x42   :  { %2912 = shalt.err (!%p2909_p3)
}
  0x43   :  { %80 = dma.hbm_to_vmem [thread:$0]  %s3440_s8, 256, %s3066_s28, [#allocation9], %s2945_s25, %s2945_s25, %s2946_s26  }
  0x44   :  { %2935 = dma.done.wait [#allocation3], 1024  }
  0x45   :  { %2936 = vsyncadd [#allocation3], 4294966272 }
  0x46   :  { %2937 = dma.done.wait [#allocation6], 2048  }
  0x47   :  { %2938 = vsyncadd [#allocation6], 4294965248 }
  0x48   :  { %2939 = dma.done.wait [#allocation9], 256  }
  0x49   :  { %2940 = vsyncadd [#allocation9], 4294967040  ;;  %v2949_v0 = vmov 0.0   ;;  %vm2950_vm0 = vmmov 0   ;;  %v2741_v1 = vld [vmem:[%s3433_s1] sm:$0xff]   ;;  %v2742_v2 = vld [vmem:[%s3433_s1 + $0x8] sm:$0xff]  }
  0x4a   :  { %2478 = vmatprep.subr.bf16.mxu0 %v2949_v0  ;;  %2482 = vmatprep.mubr.msk.bf16.mxu0 %vm2950_vm0, %v2949_v0  ;;  %v104_v3 = vld [vmem:[%s3432_s0] sm:$0xff]  ;;  %v105_v4 = vld [vmem:[%s3432_s0 + $0x8] sm:$0xff]  ;;  %vm129_vm1 = vcmask 261120   ;;  %vm418_vm2 = vcmask 1043456   ;;  %vm388_vm3 = vcmask 64512   ;;  %v2747_v60 = vld [vmem:[#allocation2 + $0x10] sm:$0xff]  }
  0x4b   :  { %2502 = vmatprep.subr.bf16.mxu1 %v2949_v0  ;;  %2504 = vmatprep.mubr.msk.bf16.mxu1 %vm2950_vm0, %v2949_v0  ;;  %v2743_v5 = vld [vmem:[#allocation2] sm:$0xff]   ;;  %v3122_v6 = vpack.c.bf16 %v105_v4, %v104_v3  ;;  %v2744_v7 = vld [vmem:[#allocation2 + $0x8] sm:$0xff]   ;;  %v2750_v4 = vld [vmem:[%s3433_s1 + $0x18] sm:$0xff]  }
  0x4c   :  { %2479 = vmatpush3.bf16.msra.mxu0 %v2741_v1  ;;  %v2745_v8 = vld [vmem:[#allocation5] sm:$0xff]   ;;  %v2746_v9 = vld [vmem:[#allocation5 + $0x8] sm:$0xff]   ;;  %v2748_v1 = vld [vmem:[#allocation2 + $0x18] sm:$0xff]  }
  0x4d   :  { %2480 = vmatprep.subr.bf16.mxu0 %v2949_v0 }
  0x50   :  { %2481 = vmatpush3.bf16.msra.mxu0 %v2742_v2  ;;  %v2749_v2 = vld [vmem:[%s3433_s1 + $0x10] sm:$0xff]  }
  0x51   :  { %2486 = vmatprep.subr.bf16.mxu0 %v2949_v0 }
  0x53   :  { %2483 = vmatmul.mubr.msk.bf16.vlgmr.msra.gmra.mrb[0].mxu0 %vm129_vm1, %v3122_v6 }
  0x54   :  { %2487 = vmatpush3.bf16.msra.mxu0 %v2743_v5  ;;  %2490 = vmatprep.mubr.msk.bf16.mxu0 %vm2950_vm0, %v2949_v0  ;;  %v2751_v5 = vld [vmem:[#allocation5 + $0x10] sm:$0xff]  }
  0x55   :  { %2488 = vmatprep.subr.bf16.mxu0 %v2949_v0 }
  0x58   :  { %2489 = vmatpush3.bf16.msra.mxu0 %v2744_v7  ;;  %v2752_v7 = vld [vmem:[#allocation5 + $0x18] sm:$0xff]  }
  0x59   :  { %2494 = vmatprep.subr.bf16.mxu0 %v2949_v0 }
  0x5b   :  { %2491 = vmatmul.mubr.msk.bf16.vlgmr.msra.gmra.mrb[4].mxu0 %vm129_vm1, %v3122_v6 }
  0x5c   :  { %2498 = vmatprep.mubr.msk.bf16.mxu0 %vm2950_vm0, %v2949_v0  ;;  %2495 = vmatpush3.bf16.msra.mxu0 %v2745_v8 }
  0x5d   :  { %2496 = vmatprep.subr.bf16.mxu0 %v2949_v0 }
  0x60   :  { %2497 = vmatpush3.bf16.msra.mxu0 %v2746_v9 }
  0x61   :  { %2508 = vmatprep.subr.bf16.mxu0 %v2949_v0 }
  0x63   :  { %2499 = vmatmul.mubr.msk.bf16.vlgmr.msra.gmra.mrb[8].mxu0 %vm129_vm1, %v3122_v6 }
  0x64   :  { %2510 = vmatprep.mubr.msk.bf16.mxu0 %vm2950_vm0, %v2949_v0 }
 0x126   :  { %v167_v10 = vpop.f32.mrb[0].mxu0 }
 0x127   :  { %v2484_v11 = vpop.f32.mrb[1].mxu0  ;;  %v174_v23 = vmul.f32 0.4204482, %v167_v10 }
 0x128   :  { %v170_v12 = vpop.f32.mrb[2].mxu0 }
 0x129   :  { %v2485_v13 = vpop.f32.mrb[3].mxu0  ;;  %v175_v25 = vmul.f32 0.4204482, %v170_v12  ;;  %v292_v26 = vpack.c.bf16 %v174_v23, %v174_v23 }
 0x12b   :  { %v293_v27 = vpack.c.bf16 %v175_v25, %v175_v25 }
 0x12e   :  { %v226_v14 = vpop.f32.mrb[4].mxu0 }
 0x12f   :  { %v233_v15 = vmul.f32 0.4204482, %v226_v14  ;;  %v2492_v16 = vpop.f32.mrb[5].mxu0 }
 0x130   :  { %v229_v17 = vpop.f32.mrb[6].mxu0 }
 0x131   :  { %v294_v18 = vpack.c.bf16 %v233_v15, %v233_v15  ;;  %v234_v19 = vmul.f32 0.4204482, %v229_v17  ;;  %v2493_v20 = vpop.f32.mrb[7].mxu0 }
 0x133   :  { %v295_v21 = vpack.c.bf16 %v234_v19, %v234_v19  ;;  %v300_v22 = vsel %vm129_vm1, %v294_v18, 0 }
 0x134   :  { %2503 = vmatpush3.bf16.xpose.msra.mxu1 %v300_v22 }
 0x135   :  { %v346_v24 = vsel %vm129_vm1, %v295_v21, 0  ;;  %2514 = vmatprep.subr.bf16.mxu1 %v2949_v0 }
 0x136   :  { %2509 = vmatpush3.bf16.xpose.msra.mxu0 %v346_v24  ;;  %v285_v28 = vpop.f32.mrb[8].mxu0 }
 0x137   :  { %2520 = vmatprep.subr.bf16.mxu0 %v2949_v0  ;;  %v413_v29 = vpack.c.bf16 %v285_v28, %v285_v28  ;;  %v2500_v30 = vpop.f32.mrb[9].mxu0 }
 0x138   :  { %v288_v31 = vpop.f32.mrb[10].mxu0 }
 0x139   :  { %v420_v32 = vsel %vm418_vm2, %v413_v29, 0  ;;  %v414_v33 = vpack.c.bf16 %v288_v31, %v288_v31  ;;  %v2501_v34 = vpop.f32.mrb[11].mxu0 }
 0x13b   :  { %2505 = vmatmul.mubr.msk.bf16.vlgmr.msra.gmra.mrb[0].mxu1 %vm129_vm1, %v292_v26  ;;  %v466_v35 = vsel %vm418_vm2, %v414_v33, 0 }
 0x13c   :  { %2516 = vmatprep.mubr.msk.bf16.mxu1 %vm2950_vm0, %v2949_v0  ;;  %2515 = vmatpush3.bf16.msra.mxu1 %v420_v32 }
 0x13d   :  { %2511 = vmatmul.mubr.msk.bf16.vlgmr.msra.gmra.mrb[12].mxu0 %vm129_vm1, %v293_v27  ;;  %2526 = vmatprep.subr.bf16.mxu1 %v2949_v0 }
 0x13e   :  { %2522 = vmatprep.mubr.msk.bf16.mxu0 %vm2950_vm0, %v2949_v0  ;;  %2521 = vmatpush3.bf16.msra.mxu0 %v466_v35 }
 0x13f   :  { %2534 = vmatprep.subr.bf16.mxu0 %v2949_v0 }
 0x20e   :  { %v336_v36 = vpop.f32.mrb[0].mxu1 }
 0x20f   :  { %v2506_v37 = vpop.f32.mrb[1].mxu1  ;;  %v389_v45 = vsel %vm388_vm3, %v336_v36, -inf }
 0x210   :  { %v339_v38 = vpop.f32.mrb[2].mxu1  ;;  %v382_v39 = vpop.f32.mrb[12].mxu0 }
 0x211   :  { %v2507_v40 = vpop.f32.mrb[3].mxu1  ;;  %v2512_v41 = vpop.f32.mrb[13].mxu0  ;;  %v392_v42 = vsel %vm388_vm3, %v382_v39, -inf }
 0x212   :  { %393 = vmax.xlane.f32.xlu0 %v392_v42  ;;  %v385_v43 = vpop.f32.mrb[14].mxu0 }
 0x213   :  { %v2513_v44 = vpop.f32.mrb[15].mxu0 }
 0x216   :  { %390 = vmax.xlane.f32.xlu0 %v389_v45 }
 0x29f   :  { %v394_v46 = vpop.xlane.xlu0 %393 }
 0x2a0   :  { %v396_v47 = vsub.f32 %v382_v39, %v394_v46 }
 0x2a2   :  { %v399_v48 = vmul.f32 1.442695, %v396_v47 }
 0x2a3   :  { %v391_v49 = vpop.xlane.xlu0 %390 }
 0x2a4   :  { %2783 = vpow2.f32 %v399_v48  ;;  %v395_v50 = vsub.f32 %v336_v36, %v391_v49 }
 0x2a6   :  { %v397_v51 = vmul.f32 1.442695, %v395_v50 }
 0x2a8   :  { %2785 = vpow2.f32 %v397_v51 }
 0x2ae   :  { %v2784_v52 = vpop.eup %2783 }
 0x2af   :  { %v404_v53 = vsel %vm388_vm3, %v2784_v52, 0.0 }
 0x2b0   :  { %405 = vadd.xlane.f32.xlu1 %v404_v53 }
 0x2b2   :  { %v2786_v54 = vpop.eup %2785 }
 0x2b3   :  { %v401_v55 = vsel %vm388_vm3, %v2786_v54, 0.0 }
 0x2b4   :  { %402 = vadd.xlane.f32.xlu1 %v401_v55 }
 0x33d   :  { %v406_v56 = vpop.xlane.xlu1 %405 }
 0x33e   :  { %2787 = vrcp.f32 %v406_v56 }
 0x341   :  { %v403_v57 = vpop.xlane.xlu1 %402 }
 0x342   :  { %2789 = vrcp.f32 %v403_v57 }
 0x348   :  { %v2788_v58 = vpop.eup %2787 }
 0x349   :  { %v410_v59 = vmul.f32 %v2788_v58, %v2784_v52 }
 0x34b   :  { %v412_v61 = vpack.c.bf16 %v410_v59, %v410_v59 }
 0x34c   :  { %v2790_v62 = vpop.eup %2789 }
 0x34d   :  { %v409_v63 = vmul.f32 %v2790_v62, %v2786_v54  ;;  %2523 = vmatmul.mubr.msk.bf16.vlgmr.msra.gmra.mrb[16].mxu0 %vm388_vm3, %v412_v61 }
 0x34e   :  { %2535 = vmatpush3.bf16.msra.mxu0 %v2747_v60  ;;  %2538 = vmatprep.mubr.msk.bf16.mxu0 %vm2950_vm0, %v2949_v0 }
 0x34f   :  { %v411_v3 = vpack.c.bf16 %v409_v63, %v409_v63  ;;  %2536 = vmatprep.subr.bf16.mxu0 %v2949_v0 }
 0x351   :  { %2517 = vmatmul.mubr.msk.bf16.vlgmr.msra.gmra.mrb[4].mxu1 %vm388_vm3, %v411_v3 }
 0x352   :  { %2537 = vmatpush3.bf16.msra.mxu0 %v2748_v1  ;;  %2527 = vmatpush3.bf16.msra.mxu1 %v2749_v2 }
 0x353   :  { %2528 = vmatprep.subr.bf16.mxu1 %v2949_v0  ;;  %2530 = vmatprep.mubr.msk.bf16.mxu1 %vm2950_vm0, %v2949_v0 }
 0x354   :  { %2550 = vmatprep.subr.bf16.mxu0 %v2949_v0 }
 0x355   :  { %2539 = vmatmul.mubr.msk.bf16.vlgmr.msra.gmra.mrb[20].mxu0 %vm129_vm1, %v3122_v6 }
 0x356   :  { %2529 = vmatpush3.bf16.msra.mxu1 %v2750_v4  ;;  %2552 = vmatprep.mubr.msk.bf16.mxu0 %vm2950_vm0, %v2949_v0 }
 0x357   :  { %2542 = vmatprep.subr.bf16.mxu1 %v2949_v0 }
 0x359   :  { %2531 = vmatmul.mubr.msk.bf16.vlgmr.msra.gmra.mrb[8].mxu1 %vm129_vm1, %v3122_v6 }
 0x35a   :  { %2546 = vmatprep.mubr.msk.bf16.mxu1 %vm2950_vm0, %v2949_v0  ;;  %2543 = vmatpush3.bf16.msra.mxu1 %v2751_v5  ;;  %v2756_v5 = vld [vmem:[#allocation7 + $0x10] sm:$0xff]  }
 0x35b   :  { %2544 = vmatprep.subr.bf16.mxu1 %v2949_v0 }
 0x35e   :  { %2545 = vmatpush3.bf16.msra.mxu1 %v2752_v7 }
 0x35f   :  { %2556 = vmatprep.subr.bf16.mxu1 %v2949_v0 }
 0x361   :  { %2547 = vmatmul.mubr.msk.bf16.vlgmr.msra.gmra.mrb[12].mxu1 %vm129_vm1, %v3122_v6 }
 0x362   :  { %2558 = vmatprep.mubr.msk.bf16.mxu1 %vm2950_vm0, %v2949_v0 }
 0x420   :  { %v3189_v8 = vpop.f32.mrb[16].mxu0 }
 0x421   :  { %v2524_v9 = vpop.f32.mrb[17].mxu0 }
 0x422   :  { %v505_v10 = vpop.f32.mrb[18].mxu0 }
 0x423   :  { %v2525_v11 = vpop.f32.mrb[19].mxu0  ;;  %v2753_v10 = vld [vmem:[#allocation7] sm:$0xff]  }
 0x424   :  { %v3191_v12 = vpop.f32.mrb[4].mxu1 }
 0x425   :  { %v2381_v13 = vpack.c.bf16 %v3189_v8, %v3191_v12  ;;  %v2518_v14 = vpop.f32.mrb[5].mxu1 }
 0x426   :  { %v459_v15 = vpop.f32.mrb[6].mxu1  ;;  %v2754_v14 = vld [vmem:[#allocation7 + $0x8] sm:$0xff]  }
 0x427   :  { %v2519_v16 = vpop.f32.mrb[7].mxu1  ;;  %v2755_v15 = vld [vmem:[#allocation2 + $0x20] sm:$0xff]  }
 0x428   :  { %v625_v17 = vpop.f32.mrb[20].mxu0  ;;  %v2757_v16 = vld [vmem:[#allocation2 + $0x28] sm:$0xff]  }
 0x429   :  { %v632_v18 = vmul.f32 0.4204482, %v625_v17  ;;  %v2540_v19 = vpop.f32.mrb[21].mxu0  ;;  %v2758_v17 = vld [vmem:[#allocation7 + $0x18] sm:$0xff]  }
 0x42a   :  { %v628_v20 = vpop.f32.mrb[22].mxu0  ;;  %v2759_v19 = vld [vmem:[%s3433_s1 + $0x20] sm:$0xff]  }
 0x42b   :  { %v694_v21 = vpack.c.bf16 %v632_v18, %v632_v18  ;;  %v633_v22 = vmul.f32 0.4204482, %v628_v20  ;;  %v2541_v23 = vpop.f32.mrb[23].mxu0 }
 0x42c   :  { %v565_v24 = vpop.f32.mrb[8].mxu1 }
 0x42d   :  { %v700_v25 = vsel %vm129_vm1, %v694_v21, 0  ;;  %v695_v26 = vpack.c.bf16 %v633_v22, %v633_v22  ;;  %v572_v27 = vmul.f32 0.4204482, %v565_v24  ;;  %v2532_v28 = vpop.f32.mrb[9].mxu1 }
 0x42e   :  { %2551 = vmatpush3.bf16.xpose.msra.mxu0 %v700_v25  ;;  %v568_v29 = vpop.f32.mrb[10].mxu1  ;;  %v2760_v25 = vld [vmem:[%s3433_s1 + $0x28] sm:$0xff]  }
 0x42f   :  { %v746_v30 = vsel %vm129_vm1, %v695_v26, 0  ;;  %v2533_v31 = vpop.f32.mrb[11].mxu1  ;;  %2562 = vmatprep.subr.bf16.mxu0 %v2949_v0  ;;  %v692_v32 = vpack.c.bf16 %v572_v27, %v572_v27  ;;  %v573_v33 = vmul.f32 0.4204482, %v568_v29  ;;  %v2761_v27 = vld [vmem:[#allocation5 + $0x20] sm:$0xff]  }
 0x430   :  { %2557 = vmatpush3.bf16.xpose.msra.mxu1 %v746_v30  ;;  %v2762_v31 = vld [vmem:[#allocation5 + $0x28] sm:$0xff]  }
 0x431   :  { %2568 = vmatprep.subr.bf16.mxu1 %v2949_v0  ;;  %v693_v34 = vpack.c.bf16 %v573_v33, %v573_v33 }
 0x434   :  { %v685_v35 = vpop.f32.mrb[12].mxu1 }
 0x435   :  { %2553 = vmatmul.mubr.msk.bf16.vlgmr.msra.gmra.mrb[24].mxu0 %vm129_vm1, %v692_v32  ;;  %v812_v36 = vpack.c.bf16 %v685_v35, %v685_v35  ;;  %v2548_v37 = vpop.f32.mrb[13].mxu1 }
 0x436   :  { %2564 = vmatprep.mubr.msk.bf16.mxu0 %vm2950_vm0, %v2949_v0  ;;  %v688_v38 = vpop.f32.mrb[14].mxu1 }
 0x437   :  { %2559 = vmatmul.mubr.msk.bf16.vlgmr.msra.gmra.mrb[16].mxu1 %vm129_vm1, %v693_v34  ;;  %v818_v39 = vsel %vm418_vm2, %v812_v36, 0  ;;  %v813_v40 = vpack.c.bf16 %v688_v38, %v688_v38  ;;  %v2549_v41 = vpop.f32.mrb[15].mxu1 }
 0x438   :  { %2570 = vmatprep.mubr.msk.bf16.mxu1 %vm2950_vm0, %v2949_v0  ;;  %2563 = vmatpush3.bf16.msra.mxu0 %v818_v39 }
 0x439   :  { %v864_v42 = vsel %vm418_vm2, %v813_v40, 0  ;;  %2574 = vmatprep.subr.bf16.mxu0 %v2949_v0 }
 0x43a   :  { %2569 = vmatpush3.bf16.msra.mxu1 %v864_v42 }
 0x43b   :  { %2582 = vmatprep.subr.bf16.mxu1 %v2949_v0 }
 0x508   :  { %v736_v43 = vpop.f32.mrb[24].mxu0 }
 0x509   :  { %v2554_v44 = vpop.f32.mrb[25].mxu0  ;;  %v788_v45 = vsel %vm388_vm3, %v736_v43, -inf }
 0x50a   :  { %v782_v46 = vpop.f32.mrb[16].mxu1  ;;  %789 = vmax.xlane.f32.xlu0 %v788_v45  ;;  %v739_v47 = vpop.f32.mrb[26].mxu0 }
 0x50b   :  { %v2555_v48 = vpop.f32.mrb[27].mxu0  ;;  %v2560_v49 = vpop.f32.mrb[17].mxu1  ;;  %v791_v50 = vsel %vm388_vm3, %v782_v46, -inf }
 0x50c   :  { %792 = vmax.xlane.f32.xlu1 %v791_v50  ;;  %v785_v51 = vpop.f32.mrb[18].mxu1 }
 0x50d   :  { %v2561_v52 = vpop.f32.mrb[19].mxu1 }
 0x597   :  { %v790_v53 = vpop.xlane.xlu0 %789 }
 0x598   :  { %v794_v54 = vsub.f32 %v736_v43, %v790_v53 }
 0x599   :  { %v793_v55 = vpop.xlane.xlu1 %792 }
 0x59a   :  { %v796_v56 = vmul.f32 1.442695, %v794_v54  ;;  %v795_v57 = vsub.f32 %v782_v46, %v793_v55 }
 0x59c   :  { %2791 = vpow2.f32 %v796_v56  ;;  %v798_v58 = vmul.f32 1.442695, %v795_v57 }
 0x59e   :  { %2793 = vpow2.f32 %v798_v58 }
 0x5a6   :  { %v2792_v59 = vpop.eup %2791 }
 0x5a7   :  { %v800_v60 = vsel %vm388_vm3, %v2792_v59, 0.0 }
 0x5a8   :  { %v2794_v61 = vpop.eup %2793  ;;  %801 = vadd.xlane.f32.xlu0 %v800_v60 }
 0x5a9   :  { %v803_v62 = vsel %vm388_vm3, %v2794_v61, 0.0 }
 0x5aa   :  { %804 = vadd.xlane.f32.xlu1 %v803_v62 }
 0x635   :  { %v802_v63 = vpop.xlane.xlu0 %801 }
 0x636   :  { %2795 = vrcp.f32 %v802_v63 }
 0x637   :  { %v805_v1 = vpop.xlane.xlu1 %804 }
 0x638   :  { %2797 = vrcp.f32 %v805_v1 }
 0x640   :  { %v2796_v2 = vpop.eup %2795 }
 0x641   :  { %v808_v3 = vmul.f32 %v2796_v2, %v2792_v59 }
 0x642   :  { %v2798_v4 = vpop.eup %2797 }
 0x643   :  { %v809_v7 = vmul.f32 %v2798_v4, %v2794_v61  ;;  %v810_v9 = vpack.c.bf16 %v808_v3, %v808_v3 }
 0x645   :  { %2565 = vmatmul.mubr.msk.bf16.vlgmr.msra.gmra.mrb[28].mxu0 %vm388_vm3, %v810_v9  ;;  %v811_v11 = vpack.c.bf16 %v809_v7, %v809_v7 }
 0x646   :  { %2575 = vmatpush3.bf16.msra.mxu0 %v2756_v5  ;;  %2578 = vmatprep.mubr.msk.bf16.mxu0 %vm2950_vm0, %v2949_v0 }
 0x647   :  { %2571 = vmatmul.mubr.msk.bf16.vlgmr.msra.gmra.mrb[20].mxu1 %vm388_vm3, %v811_v11  ;;  %2576 = vmatprep.subr.bf16.mxu0 %v2949_v0 }
 0x648   :  { %2583 = vmatpush3.bf16.msra.mxu1 %v2753_v10  ;;  %2586 = vmatprep.mubr.msk.bf16.mxu1 %vm2950_vm0, %v2949_v0 }
 0x649   :  { %2584 = vmatprep.subr.bf16.mxu1 %v2949_v0 }
 0x64a   :  { %2577 = vmatpush3.bf16.msra.mxu0 %v2758_v17 }
 0x64b   :  { %2590 = vmatprep.subr.bf16.mxu0 %v2949_v0 }
 0x64c   :  { %2585 = vmatpush3.bf16.msra.mxu1 %v2754_v14 }
 0x64d   :  { %2598 = vmatprep.subr.bf16.mxu1 %v2949_v0 }
 0x64f   :  { %2587 = vmatmul.mubr.msk.bf16.vlgmr.msra.gmra.mrb[24].mxu1 %vm129_vm1, %v2381_v13 }
 0x650   :  { %2599 = vmatpush3.bf16.msra.mxu1 %v2755_v15  ;;  %2602 = vmatprep.mubr.msk.bf16.mxu1 %vm2950_vm0, %v2949_v0 }
 0x651   :  { %2600 = vmatprep.subr.bf16.mxu1 %v2949_v0 }
 0x654   :  { %2601 = vmatpush3.bf16.msra.mxu1 %v2757_v16 }
 0x655   :  { %2614 = vmatprep.subr.bf16.mxu1 %v2949_v0 }
 0x657   :  { %2603 = vmatmul.mubr.msk.bf16.vlgmr.msra.gmra.mrb[28].mxu1 %vm129_vm1, %v3122_v6 }
 0x658   :  { %2616 = vmatprep.mubr.msk.bf16.mxu1 %vm2950_vm0, %v2949_v0 }
 0x718   :  { %v854_v8 = vpop.f32.mrb[28].mxu0 }
 0x719   :  { %v2566_v12 = vpop.f32.mrb[29].mxu0 }
 0x71a   :  { %v857_v13 = vpop.f32.mrb[30].mxu0  ;;  %v900_v18 = vpop.f32.mrb[20].mxu1 }
 0x71b   :  { %v2380_v20 = vpack.c.bf16 %v900_v18, %v854_v8  ;;  %v2567_v21 = vpop.f32.mrb[31].mxu0  ;;  %v2572_v22 = vpop.f32.mrb[21].mxu1 }
 0x71c   :  { %v903_v23 = vpop.f32.mrb[22].mxu1 }
 0x71d   :  { %v2573_v24 = vpop.f32.mrb[23].mxu1  ;;  %2579 = vmatmul.mubr.msk.bf16.vlgmr.msra.gmra.mrb[32].mxu0 %vm129_vm1, %v2380_v20 }
 0x71e   :  { %2591 = vmatpush3.bf16.msra.mxu0 %v2759_v19  ;;  %2594 = vmatprep.mubr.msk.bf16.mxu0 %vm2950_vm0, %v2949_v0 }
 0x71f   :  { %2592 = vmatprep.subr.bf16.mxu0 %v2949_v0 }
 0x722   :  { %v1028_v26 = vpop.f32.mrb[24].mxu1  ;;  %2593 = vmatpush3.bf16.msra.mxu0 %v2760_v25 }
 0x723   :  { %v2588_v28 = vpop.f32.mrb[25].mxu1  ;;  %2606 = vmatprep.subr.bf16.mxu0 %v2949_v0 }
 0x724   :  { %v1031_v29 = vpop.f32.mrb[26].mxu1 }
 0x725   :  { %v2589_v30 = vpop.f32.mrb[27].mxu1  ;;  %2595 = vmatmul.mubr.msk.bf16.vlgmr.msra.gmra.mrb[36].mxu0 %vm129_vm1, %v3122_v6 }
 0x726   :  { %2607 = vmatpush3.bf16.msra.mxu0 %v2761_v27  ;;  %2610 = vmatprep.mubr.msk.bf16.mxu0 %vm2950_vm0, %v2949_v0  ;;  %v2763_v27 = vld [vmem:[#allocation7 + $0x20] sm:$0xff]  }
 0x727   :  { %2608 = vmatprep.subr.bf16.mxu0 %v2949_v0 }
 0x72a   :  { %v1146_v32 = vpop.f32.mrb[28].mxu1  ;;  %2609 = vmatpush3.bf16.msra.mxu0 %v2762_v31  ;;  %v2764_v31 = vld [vmem:[#allocation7 + $0x28] sm:$0xff]  }
 0x72b   :  { %v1153_v33 = vmul.f32 0.4204482, %v1146_v32  ;;  %v2604_v34 = vpop.f32.mrb[29].mxu1  ;;  %2620 = vmatprep.subr.bf16.mxu0 %v2949_v0  ;;  %v2767_v32 = vld [vmem:[%s3433_s1 + $0x30] sm:$0xff]  }
 0x72c   :  { %v1149_v35 = vpop.f32.mrb[30].mxu1 }
 0x72d   :  { %v1215_v36 = vpack.c.bf16 %v1153_v33, %v1153_v33  ;;  %v1154_v37 = vmul.f32 0.4204482, %v1149_v35  ;;  %v2605_v38 = vpop.f32.mrb[31].mxu1  ;;  %2611 = vmatmul.mubr.msk.bf16.vlgmr.msra.gmra.mrb[40].mxu0 %vm129_vm1, %v3122_v6  ;;  %v2768_v33 = vld [vmem:[%s3433_s1 + $0x38] sm:$0xff]  }
 0x72e   :  { %2622 = vmatprep.mubr.msk.bf16.mxu0 %vm2950_vm0, %v2949_v0  ;;  %v2765_v38 = vld [vmem:[#allocation2 + $0x30] sm:$0xff]  }
 0x72f   :  { %v1221_v39 = vsel %vm129_vm1, %v1215_v36, 0  ;;  %v1216_v40 = vpack.c.bf16 %v1154_v37, %v1154_v37 }
 0x730   :  { %2615 = vmatpush3.bf16.xpose.msra.mxu1 %v1221_v39 }
 0x731   :  { %v1267_v41 = vsel %vm129_vm1, %v1216_v40, 0  ;;  %2626 = vmatprep.subr.bf16.mxu1 %v2949_v0 }
 0x733   :  { %2621 = vmatpush3.bf16.xpose.msra.mxu0 %v1267_v41 }
 0x734   :  { %2632 = vmatprep.subr.bf16.mxu0 %v2949_v0 }
 0x7f0   :  { %v967_v42 = vpop.f32.mrb[32].mxu0 }
 0x7f1   :  { %v3260_v43 = vadd.f32 %v1028_v26, %v967_v42  ;;  %v2580_v44 = vpop.f32.mrb[33].mxu0 }
 0x7f2   :  { %v970_v45 = vpop.f32.mrb[34].mxu0 }
 0x7f3   :  { %v3262_v46 = vadd.f32 %v1031_v29, %v970_v45  ;;  %v2581_v47 = vpop.f32.mrb[35].mxu0  ;;  %v2766_v45 = vld [vmem:[#allocation2 + $0x38] sm:$0xff]  }
 0x7f4   :  { %v2769_v47 = vld [vmem:[#allocation5 + $0x30] sm:$0xff]  }
 0x7f8   :  { %v1086_v48 = vpop.f32.mrb[36].mxu0 }
 0x7f9   :  { %v1093_v49 = vmul.f32 0.4204482, %v1086_v48  ;;  %v2596_v50 = vpop.f32.mrb[37].mxu0  ;;  %v2770_v48 = vld [vmem:[#allocation5 + $0x38] sm:$0xff]  }
 0x7fa   :  { %v1089_v51 = vpop.f32.mrb[38].mxu0 }
 0x7fb   :  { %v1213_v52 = vpack.c.bf16 %v1093_v49, %v1093_v49  ;;  %v1094_v53 = vmul.f32 0.4204482, %v1089_v51  ;;  %v2597_v54 = vpop.f32.mrb[39].mxu0 }
 0x7fd   :  { %v1214_v55 = vpack.c.bf16 %v1094_v53, %v1094_v53  ;;  %2617 = vmatmul.mubr.msk.bf16.vlgmr.msra.gmra.mrb[32].mxu1 %vm129_vm1, %v1213_v52 }
 0x7fe   :  { %2628 = vmatprep.mubr.msk.bf16.mxu1 %vm2950_vm0, %v2949_v0 }
 0x7ff   :  { %2623 = vmatmul.mubr.msk.bf16.vlgmr.msra.gmra.mrb[44].mxu0 %vm129_vm1, %v1214_v55 }
 0x800   :  { %v1206_v56 = vpop.f32.mrb[40].mxu0  ;;  %2634 = vmatprep.mubr.msk.bf16.mxu0 %vm2950_vm0, %v2949_v0 }
 0x801   :  { %v1333_v57 = vpack.c.bf16 %v1206_v56, %v1206_v56  ;;  %v2612_v58 = vpop.f32.mrb[41].mxu0 }
 0x802   :  { %v1209_v59 = vpop.f32.mrb[42].mxu0 }
 0x803   :  { %v1339_v60 = vsel %vm418_vm2, %v1333_v57, 0  ;;  %v1334_v61 = vpack.c.bf16 %v1209_v59, %v1209_v59  ;;  %v2613_v62 = vpop.f32.mrb[43].mxu0 }
 0x804   :  { %2627 = vmatpush3.bf16.msra.mxu1 %v1339_v60 }
 0x805   :  { %v1385_v63 = vsel %vm418_vm2, %v1334_v61, 0  ;;  %2638 = vmatprep.subr.bf16.mxu1 %v2949_v0 }
 0x806   :  { %2633 = vmatpush3.bf16.msra.mxu0 %v1385_v63 }
 0x807   :  { %2646 = vmatprep.subr.bf16.mxu0 %v2949_v0 }
 0x8d0   :  { %v1257_v1 = vpop.f32.mrb[32].mxu1 }
 0x8d1   :  { %v2618_v2 = vpop.f32.mrb[33].mxu1  ;;  %v1309_v3 = vsel %vm388_vm3, %v1257_v1, -inf }
 0x8d2   :  { %1310 = vmax.xlane.f32.xlu0 %v1309_v3  ;;  %v1260_v4 = vpop.f32.mrb[34].mxu1  ;;  %v1303_v5 = vpop.f32.mrb[44].mxu0 }
 0x8d3   :  { %v2619_v7 = vpop.f32.mrb[35].mxu1  ;;  %v2624_v9 = vpop.f32.mrb[45].mxu0  ;;  %v1312_v10 = vsel %vm388_vm3, %v1303_v5, -inf }
 0x8d4   :  { %1313 = vmax.xlane.f32.xlu1 %v1312_v10  ;;  %v1306_v11 = vpop.f32.mrb[46].mxu0 }
 0x8d5   :  { %v2625_v14 = vpop.f32.mrb[47].mxu0 }
 0x95f   :  { %v1311_v15 = vpop.xlane.xlu0 %1310 }
 0x960   :  { %v1315_v16 = vsub.f32 %v1257_v1, %v1311_v15 }
 0x961   :  { %v1314_v17 = vpop.xlane.xlu1 %1313 }
 0x962   :  { %v1317_v8 = vmul.f32 1.442695, %v1315_v16  ;;  %v1316_v12 = vsub.f32 %v1303_v5, %v1314_v17 }
 0x964   :  { %2799 = vpow2.f32 %v1317_v8  ;;  %v1319_v13 = vmul.f32 1.442695, %v1316_v12 }
 0x966   :  { %2801 = vpow2.f32 %v1319_v13 }
 0x96e   :  { %v2800_v18 = vpop.eup %2799 }
 0x96f   :  { %v1321_v19 = vsel %vm388_vm3, %v2800_v18, 0.0 }
 0x970   :  { %v2802_v20 = vpop.eup %2801  ;;  %1322 = vadd.xlane.f32.xlu0 %v1321_v19 }
 0x971   :  { %v1324_v21 = vsel %vm388_vm3, %v2802_v20, 0.0 }
 0x972   :  { %1325 = vadd.xlane.f32.xlu1 %v1324_v21 }
 0x9fd   :  { %v1323_v22 = vpop.xlane.xlu0 %1322 }
 0x9fe   :  { %2803 = vrcp.f32 %v1323_v22 }
 0x9ff   :  { %v1326_v23 = vpop.xlane.xlu1 %1325 }
 0xa00   :  { %2805 = vrcp.f32 %v1326_v23 }
 0xa08   :  { %v2804_v24 = vpop.eup %2803 }
 0xa09   :  { %v1329_v25 = vmul.f32 %v2804_v24, %v2800_v18 }
 0xa0a   :  { %v2806_v26 = vpop.eup %2805 }
 0xa0b   :  { %v1330_v28 = vmul.f32 %v2806_v26, %v2802_v20  ;;  %v1331_v29 = vpack.c.bf16 %v1329_v25, %v1329_v25 }
 0xa0d   :  { %2629 = vmatmul.mubr.msk.bf16.vlgmr.msra.gmra.mrb[36].mxu1 %vm388_vm3, %v1331_v29  ;;  %v1332_v30 = vpack.c.bf16 %v1330_v28, %v1330_v28 }
 0xa0e   :  { %2639 = vmatpush3.bf16.msra.mxu1 %v2763_v27  ;;  %2642 = vmatprep.mubr.msk.bf16.mxu1 %vm2950_vm0, %v2949_v0 }
 0xa0f   :  { %2635 = vmatmul.mubr.msk.bf16.vlgmr.msra.gmra.mrb[48].mxu0 %vm388_vm3, %v1332_v30  ;;  %2640 = vmatprep.subr.bf16.mxu1 %v2949_v0 }
 0xa10   :  { %2650 = vmatprep.mubr.msk.bf16.mxu0 %vm2950_vm0, %v2949_v0  ;;  %2647 = vmatpush3.bf16.msra.mxu0 %v2767_v32 }
 0xa11   :  { %2648 = vmatprep.subr.bf16.mxu0 %v2949_v0 }
 0xa12   :  { %2641 = vmatpush3.bf16.msra.mxu1 %v2764_v31 }
 0xa13   :  { %2654 = vmatprep.subr.bf16.mxu1 %v2949_v0 }
 0xa14   :  { %2649 = vmatpush3.bf16.msra.mxu0 %v2768_v33 }
 0xa15   :  { %2662 = vmatprep.subr.bf16.mxu0 %v2949_v0 }
 0xa17   :  { %2651 = vmatmul.mubr.msk.bf16.vlgmr.msra.gmra.mrb[52].mxu0 %vm129_vm1, %v3122_v6 }
 0xa18   :  { %2666 = vmatprep.mubr.msk.bf16.mxu0 %vm2950_vm0, %v2949_v0  ;;  %2663 = vmatpush3.bf16.msra.mxu0 %v2769_v47  ;;  %v2772_v47 = vld [vmem:[#allocation7 + $0x38] sm:$0xff]  }
 0xa19   :  { %2664 = vmatprep.subr.bf16.mxu0 %v2949_v0 }
 0xa1c   :  { %2665 = vmatpush3.bf16.msra.mxu0 %v2770_v48 }
 0xa1d   :  { %2676 = vmatprep.subr.bf16.mxu0 %v2949_v0 }
 0xa1f   :  { %2667 = vmatmul.mubr.msk.bf16.vlgmr.msra.gmra.mrb[56].mxu0 %vm129_vm1, %v3122_v6 }
 0xa20   :  { %2678 = vmatprep.mubr.msk.bf16.mxu0 %vm2950_vm0, %v2949_v0 }
 0xae0   :  { %v1375_v34 = vpop.f32.mrb[36].mxu1 }
 0xae1   :  { %v2630_v35 = vpop.f32.mrb[37].mxu1 }
 0xae2   :  { %v1378_v36 = vpop.f32.mrb[38].mxu1  ;;  %v1421_v37 = vpop.f32.mrb[48].mxu0 }
 0xae3   :  { %v2382_v39 = vpack.c.bf16 %v1421_v37, %v1375_v34  ;;  %v2631_v40 = vpop.f32.mrb[39].mxu1  ;;  %v2636_v41 = vpop.f32.mrb[49].mxu0 }
 0xae4   :  { %v1424_v42 = vpop.f32.mrb[50].mxu0  ;;  %v2771_v41 = vld [vmem:[#allocation7 + $0x30] sm:$0xff]  }
 0xae5   :  { %v2637_v44 = vpop.f32.mrb[51].mxu0  ;;  %2643 = vmatmul.mubr.msk.bf16.vlgmr.msra.gmra.mrb[40].mxu1 %vm129_vm1, %v2382_v39 }
 0xae6   :  { %2655 = vmatpush3.bf16.msra.mxu1 %v2765_v38  ;;  %2658 = vmatprep.mubr.msk.bf16.mxu1 %vm2950_vm0, %v2949_v0 }
 0xae7   :  { %2656 = vmatprep.subr.bf16.mxu1 %v2949_v0 }
 0xaea   :  { %2657 = vmatpush3.bf16.msra.mxu1 %v2766_v45  ;;  %v1548_v49 = vpop.f32.mrb[52].mxu0 }
 0xaeb   :  { %2670 = vmatprep.subr.bf16.mxu1 %v2949_v0  ;;  %v2652_v50 = vpop.f32.mrb[53].mxu0  ;;  %v1555_v4 = vmul.f32 0.4204482, %v1548_v49 }
 0xaec   :  { %v1551_v51 = vpop.f32.mrb[54].mxu0 }
 0xaed   :  { %2659 = vmatmul.mubr.msk.bf16.vlgmr.msra.gmra.mrb[44].mxu1 %vm129_vm1, %v3122_v6  ;;  %v2653_v52 = vpop.f32.mrb[55].mxu0  ;;  %v1556_v5 = vmul.f32 0.4204482, %v1551_v51 }
 0xaee   :  { %2672 = vmatprep.mubr.msk.bf16.mxu1 %vm2950_vm0, %v2949_v0 }
 0xaef   :  { %v1676_v7 = vpack.c.bf16 %v1556_v5, %v1556_v5  ;;  %v2824_v5 = vld [vmem:[%s3432_s0 + $0x8] sm:$0xff] }
 0xaf2   :  { %v1668_v9 = vpop.f32.mrb[56].mxu0 }
 0xaf3   :  { %v1795_v10 = vpack.c.bf16 %v1668_v9, %v1668_v9  ;;  %v2668_v11 = vpop.f32.mrb[57].mxu0 }
 0xaf4   :  { %v1671_v14 = vpop.f32.mrb[58].mxu0 }
 0xaf5   :  { %v1801_v15 = vsel %vm418_vm2, %v1795_v10, 0  ;;  %v1796_v16 = vpack.c.bf16 %v1671_v14, %v1671_v14  ;;  %v2669_v17 = vpop.f32.mrb[59].mxu0 }
 0xaf7   :  { %v1847_v8 = vsel %vm418_vm2, %v1796_v16, 0 }
 0xbb8   :  { %v1488_v53 = vpop.f32.mrb[40].mxu1 }
 0xbb9   :  { %v3314_v54 = vadd.f32 %v1488_v53, %v3260_v43  ;;  %v2644_v55 = vpop.f32.mrb[41].mxu1 }
 0xbba   :  { %v1491_v56 = vpop.f32.mrb[42].mxu1 }
 0xbbb   :  { %v3317_v57 = vadd.f32 %v1491_v56, %v3262_v46  ;;  %v2645_v58 = vpop.f32.mrb[43].mxu1  ;;  %v1675_v46 = vpack.c.bf16 %v1555_v4, %v1555_v4  ;;  %v2823_v4 = vld [vmem:[%s3432_s0] sm:$0xff]  ;;  %s2951_s0 = smov [#allocation10]  }
 0xbc0   :  { %v1608_v59 = vpop.f32.mrb[44].mxu1 }
 0xbc1   :  { %v1615_v60 = vmul.f32 0.4204482, %v1608_v59  ;;  %v2660_v6 = vpop.f32.mrb[45].mxu1 }
 0xbc2   :  { %v1611_v61 = vpop.f32.mrb[46].mxu1 }
 0xbc3   :  { %v1677_v62 = vpack.c.bf16 %v1615_v60, %v1615_v60  ;;  %v1616_v63 = vmul.f32 0.4204482, %v1611_v61  ;;  %v2661_v1 = vpop.f32.mrb[47].mxu1  ;;  %v2359_v60 = vld [vmem:[%s3437_s5] ss:$0 sm:$0xff]  ;;  %s2264_s5 = sshll.u32 %s2951_s0, 4  ;;  %s2265_s5 = int_to_ptr.vmem [resolvable:$true] %s2264_s5 }
 0xbc4   :  { %s2913_s20 = scalar_lea.vmem %s2265_s5, 256  ;;  %p2918_p5 = scmp.lt.s32.totalorder %s2265_s5, %s2265_s5 }
 0xbc5   :  { %v1683_v2 = vsel %vm129_vm1, %v1677_v62, 0  ;;  %v1678_v3 = vpack.c.bf16 %v1616_v63, %v1616_v63  ;;  %p2914_p4 = scmp.ne.s32.totalorder %s2265_s5, %s2913_s20  ;;  %p2919_p6 = scmp.lt.s32.totalorder %s2913_s20, %s2913_s20 }
 0xbc6   :  { %2671 = vmatpush3.bf16.xpose.msra.mxu1 %v1683_v2 }
 0xbc7   :  { %v1729_v43 = vsel %vm129_vm1, %v1678_v3, 0  ;;  %2682 = vmatprep.subr.bf16.mxu1 %v2949_v0  ;;  %p2920_p7 = por %p2919_p6, %p2918_p5 }
 0xbc8   :  { %2677 = vmatpush3.bf16.xpose.msra.mxu0 %v1729_v43 }
 0xbc9   :  { %2688 = vmatprep.subr.bf16.mxu0 %v2949_v0  ;;  %p2921_p8 = pnand %p2920_p7, %p2914_p4 }
 0xbcd   :  { %2673 = vmatmul.mubr.msk.bf16.vlgmr.msra.gmra.mrb[48].mxu1 %vm129_vm1, %v1675_v46 }
 0xbce   :  { %2684 = vmatprep.mubr.msk.bf16.mxu1 %vm2950_vm0, %v2949_v0  ;;  %2683 = vmatpush3.bf16.msra.mxu1 %v1801_v15 }
 0xbcf   :  { %2679 = vmatmul.mubr.msk.bf16.vlgmr.msra.gmra.mrb[60].mxu0 %vm129_vm1, %v1676_v7  ;;  %2694 = vmatprep.subr.bf16.mxu1 %v2949_v0 }
 0xbd0   :  { %2690 = vmatprep.mubr.msk.bf16.mxu0 %vm2950_vm0, %v2949_v0  ;;  %2689 = vmatpush3.bf16.msra.mxu0 %v1847_v8 }
 0xbd1   :  { %2702 = vmatprep.subr.bf16.mxu0 %v2949_v0 }
 0xca0   :  { %v1719_v12 = vpop.f32.mrb[48].mxu1 }
 0xca1   :  { %v2674_v13 = vpop.f32.mrb[49].mxu1  ;;  %v1771_v18 = vsel %vm388_vm3, %v1719_v12, -inf }
 0xca2   :  { %1772 = vmax.xlane.f32.xlu0 %v1771_v18  ;;  %v1722_v19 = vpop.f32.mrb[50].mxu1  ;;  %v1765_v20 = vpop.f32.mrb[60].mxu0  ;;  %v2773_v13 = vld [vmem:[#allocation8] sm:$0xff]   ;;  %v2774_v18 = vld [vmem:[#allocation8 + $0x8] sm:$0xff]  }
 0xca3   :  { %v2675_v21 = vpop.f32.mrb[51].mxu1  ;;  %v2680_v22 = vpop.f32.mrb[61].mxu0  ;;  %v1774_v23 = vsel %vm388_vm3, %v1765_v20, -inf  ;;  %v2775_v19 = vld [vmem:[%s3442_s10] sm:$0xff]  }
 0xca4   :  { %1775 = vmax.xlane.f32.xlu1 %v1774_v23  ;;  %v1768_v24 = vpop.f32.mrb[62].mxu0  ;;  %v2777_v21 = vld [vmem:[%s3442_s10 + $0x10] sm:$0xff]   ;;  %v2778_v22 = vld [vmem:[%s3442_s10 + $0x18] sm:$0xff]   ;;  %v2779_v23 = vld [vmem:[%s3442_s10 + $0x20] sm:$0xff]  }
 0xca5   :  { %v2681_v25 = vpop.f32.mrb[63].mxu0  ;;  %v2780_v24 = vld [vmem:[%s3442_s10 + $0x28] sm:$0xff]  }
 0xd2f   :  { %v1773_v26 = vpop.xlane.xlu0 %1772 }
 0xd30   :  { %v1777_v27 = vsub.f32 %v1719_v12, %v1773_v26 }
 0xd31   :  { %v1776_v28 = vpop.xlane.xlu1 %1775 }
 0xd32   :  { %v1779_v29 = vmul.f32 1.442695, %v1777_v27  ;;  %v1778_v30 = vsub.f32 %v1765_v20, %v1776_v28  ;;  %v2776_v20 = vld [vmem:[%s3442_s10 + $0x8] sm:$0xff]  }
 0xd34   :  { %2807 = vpow2.f32 %v1779_v29  ;;  %v1781_v31 = vmul.f32 1.442695, %v1778_v30 }
 0xd36   :  { %2809 = vpow2.f32 %v1781_v31 }
 0xd3e   :  { %v2808_v32 = vpop.eup %2807 }
 0xd3f   :  { %v1783_v33 = vsel %vm388_vm3, %v2808_v32, 0.0 }
 0xd40   :  { %v2810_v34 = vpop.eup %2809  ;;  %1784 = vadd.xlane.f32.xlu0 %v1783_v33 }
 0xd41   :  { %v1786_v35 = vsel %vm388_vm3, %v2810_v34, 0.0 }
 0xd42   :  { %1787 = vadd.xlane.f32.xlu1 %v1786_v35 }
 0xdcd   :  { %v1785_v36 = vpop.xlane.xlu0 %1784 }
 0xdce   :  { %2811 = vrcp.f32 %v1785_v36 }
 0xdcf   :  { %v1788_v37 = vpop.xlane.xlu1 %1787 }
 0xdd0   :  { %2813 = vrcp.f32 %v1788_v37  ;;  %v2361_v37 = vld [vmem:[%s3439_s7] ss:$0 sm:$0xff] }
 0xdd8   :  { %v2812_v38 = vpop.eup %2811 }
 0xdd9   :  { %v1791_v39 = vmul.f32 %v2812_v38, %v2808_v32  ;;  %v2360_v32 = vld [vmem:[%s3438_s6] ss:$0 sm:$0xff] }
 0xdda   :  { %v2814_v40 = vpop.eup %2813 }
 0xddb   :  { %v1792_v42 = vmul.f32 %v2814_v40, %v2810_v34  ;;  %v1793_v44 = vpack.c.bf16 %v1791_v39, %v1791_v39 }
 0xddd   :  { %2685 = vmatmul.mubr.msk.bf16.vlgmr.msra.gmra.mrb[52].mxu1 %vm388_vm3, %v1793_v44  ;;  %v1794_v45 = vpack.c.bf16 %v1792_v42, %v1792_v42  ;;  %v2781_v42 = vld [vmem:[%s3442_s10 + $0x30] sm:$0xff]   ;;  %v2782_v44 = vld [vmem:[%s3442_s10 + $0x38] sm:$0xff]  }
 0xdde   :  { %2695 = vmatpush3.bf16.msra.mxu1 %v2771_v41  ;;  %2698 = vmatprep.mubr.msk.bf16.mxu1 %vm2950_vm0, %v2949_v0 }
 0xddf   :  { %2691 = vmatmul.mubr.msk.bf16.vlgmr.msra.gmra.mrb[64].mxu0 %vm388_vm3, %v1794_v45  ;;  %2696 = vmatprep.subr.bf16.mxu1 %v2949_v0  ;;  %v2362_v45 = vld [vmem:[%s3441_s9] ss:$0 sm:$0xff] }
 0xde0   :  { %2706 = vmatprep.mubr.msk.bf16.mxu0 %vm2950_vm0, %v2949_v0  ;;  %2703 = vmatpush3.bf16.msra.mxu0 %v2773_v13 }
 0xde1   :  { %2704 = vmatprep.subr.bf16.mxu0 %v2949_v0 }
 0xde2   :  { %2697 = vmatpush3.bf16.msra.mxu1 %v2772_v47 }
 0xde3   :  { %2710 = vmatprep.subr.bf16.mxu1 %v2949_v0 }
 0xde4   :  { %2705 = vmatpush3.bf16.msra.mxu0 %v2774_v18  ;;  %v2377_v18 = vld [vmem:[%s3444_s12] ss:$0 sm:$0xff] }
 0xeb0   :  { %v1837_v48 = vpop.f32.mrb[52].mxu1 }
 0xeb1   :  { %v2686_v49 = vpop.f32.mrb[53].mxu1 }
 0xeb2   :  { %v1840_v50 = vpop.f32.mrb[54].mxu1  ;;  %v1883_v51 = vpop.f32.mrb[64].mxu0 }
 0xeb3   :  { %v2383_v52 = vpack.c.bf16 %v1883_v51, %v1837_v48  ;;  %v2687_v53 = vpop.f32.mrb[55].mxu1  ;;  %v2692_v55 = vpop.f32.mrb[65].mxu0 }
 0xeb4   :  { %v1886_v56 = vpop.f32.mrb[66].mxu0 }
 0xeb5   :  { %v2693_v58 = vpop.f32.mrb[67].mxu0  ;;  %2699 = vmatmul.mubr.msk.bf16.vlgmr.msra.gmra.mrb[56].mxu1 %vm129_vm1, %v2383_v52 }
 0xeb6   :  { %2726 = vmatprep.mubr.msk.bf16.mxu1 %vm2950_vm0, %v2949_v0  ;;  %2711 = vmatpush3.bf16.msra.mxu1 %v2775_v19 }
 0xeb7   :  { %2712 = vmatprep.subr.bf16.mxu1 %v2949_v0 }
 0xeba   :  { %2713 = vmatpush3.bf16.msra.mxu1 %v2776_v20 }
 0xebb   :  { %2714 = vmatprep.subr.bf16.mxu1 %v2949_v0 }
 0xebe   :  { %2715 = vmatpush3.bf16.msra.mxu1 %v2777_v21  ;;  %v2378_v21 = vld [vmem:[%s3445_s13] ss:$0 sm:$0xff] }
 0xebf   :  { %2716 = vmatprep.subr.bf16.mxu1 %v2949_v0 }
 0xec2   :  { %2717 = vmatpush3.bf16.msra.mxu1 %v2778_v22 }
 0xec3   :  { %2718 = vmatprep.subr.bf16.mxu1 %v2949_v0 }
 0xec6   :  { %2719 = vmatpush3.bf16.msra.mxu1 %v2779_v23 }
 0xec7   :  { %2720 = vmatprep.subr.bf16.mxu1 %v2949_v0 }
 0xeca   :  { %2721 = vmatpush3.bf16.msra.mxu1 %v2780_v24 }
 0xecb   :  { %2722 = vmatprep.subr.bf16.mxu1 %v2949_v0 }
 0xece   :  { %2723 = vmatpush3.bf16.msra.mxu1 %v2781_v42 }
 0xecf   :  { %2724 = vmatprep.subr.bf16.mxu1 %v2949_v0  ;;  %v2367_v0 = vld [vmem:[%s3443_s11] ss:$0 sm:$0xff] }
 0xed2   :  { %2725 = vmatpush3.bf16.msra.mxu1 %v2782_v44 }
 0xf88   :  { %v1950_v59 = vpop.f32.mrb[56].mxu1 }
 0xf89   :  { %v1957_v6 = vadd.f32 %v1950_v59, %v3314_v54  ;;  %v2700_v61 = vpop.f32.mrb[57].mxu1 }
 0xf8a   :  { %v1953_v62 = vpop.f32.mrb[58].mxu1 }
 0xf8b   :  { %v1966_v63 = vadd.f32 %v2359_v60, %v1957_v6  ;;  %v1958_v1 = vadd.f32 %v1953_v62, %v3317_v57  ;;  %v2701_v2 = vpop.f32.mrb[59].mxu1 }
 0xf8d   :  { %v1967_v3 = vadd.f32 %v2359_v60, %v1958_v1  ;;  %v1968_v43 = vadd.f32 %v2823_v4, %v1966_v63 }
 0xf8f   :  { %v1972_v46 = vsel %vm129_vm1, %v1968_v43, 0.0  ;;  %v1969_v7 = vadd.f32 %v2824_v5, %v1967_v3 }
 0xf90   :  { %1973 = vadd.xlane.f32.xlu0 %v1972_v46 }
 0xf91   :  { %v1975_v54 = vsel %vm129_vm1, %v1969_v7, 0.0 }
 0xf92   :  { %1976 = vadd.xlane.f32.xlu1 %v1975_v54 }
0x101d   :  { %v1974_v9 = vpop.xlane.xlu0 %1973 }
0x101e   :  { %v1979_v57 = vmul.f32 0.03125, %v1974_v9 }
0x101f   :  { %v1977_v10 = vpop.xlane.xlu1 %1976 }
0x1020   :  { %v1981_v11 = vsub.f32 %v1968_v43, %v1979_v57  ;;  %v1980_v14 = vmul.f32 0.03125, %v1977_v10 }
0x1022   :  { %v1982_v15 = vsub.f32 %v1969_v7, %v1980_v14  ;;  %v1983_v16 = vmul.f32 %v1981_v11, %v1981_v11 }
0x1024   :  { %v1985_v17 = vsel %vm129_vm1, %v1983_v16, 0.0  ;;  %v1984_v8 = vmul.f32 %v1982_v15, %v1982_v15 }
0x1025   :  { %1986 = vadd.xlane.f32.xlu0 %v1985_v17 }
0x1026   :  { %v1988_v12 = vsel %vm129_vm1, %v1984_v8, 0.0 }
0x1027   :  { %1989 = vadd.xlane.f32.xlu1 %v1988_v12 }
0x10b2   :  { %v1987_v25 = vpop.xlane.xlu0 %1986 }
0x10b3   :  { %v1991_v26 = vmul.f32 0.03125, %v1987_v25 }
0x10b4   :  { %v1990_v27 = vpop.xlane.xlu1 %1989 }
0x10b5   :  { %v1993_v28 = vadd.f32 1e-05, %v1991_v26  ;;  %v1992_v29 = vmul.f32 0.03125, %v1990_v27 }
0x10b7   :  { %2815 = vrsqrt.f32 %v1993_v28  ;;  %v1994_v30 = vadd.f32 1e-05, %v1992_v29 }
0x10b9   :  { %2817 = vrsqrt.f32 %v1994_v30 }
0x10c1   :  { %v2816_v31 = vpop.eup %2815 }
0x10c2   :  { %v1997_v33 = vmul.f32 %v2816_v31, %v1981_v11 }
0x10c3   :  { %v2818_v34 = vpop.eup %2817 }
0x10c4   :  { %v2005_v35 = vmul.f32 %v2360_v32, %v1997_v33  ;;  %v1998_v36 = vmul.f32 %v2818_v34, %v1982_v15 }
0x10c6   :  { %v2006_v38 = vmul.f32 %v2360_v32, %v1998_v36  ;;  %v2013_v39 = vadd.f32 %v2361_v37, %v2005_v35 }
0x10c8   :  { %v2014_v40 = vadd.f32 %v2361_v37, %v2006_v38 }
0x10ca   :  { %v2384_v41 = vpack.c.bf16 %v2014_v40, %v2013_v39 }
0x10cc   :  { %2707 = vmatmul.mubr.msk.bf16.vlgmr.msra.gmra.mrb[68].mxu0 %vm129_vm1, %v2384_v41 }
0x119f   :  { %v2082_v47 = vpop.f32.mrb[68].mxu0 }
0x11a0   :  { %v2083_v48 = vadd.f32 %v2362_v45, %v2082_v47  ;;  %v2708_v49 = vpop.f32.mrb[69].mxu0 }
0x11a1   :  { %v2085_v50 = vpop.f32.mrb[70].mxu0 }
0x11a2   :  { %v2086_v51 = vadd.f32 %v2362_v45, %v2085_v50  ;;  %v2709_v52 = vpop.f32.mrb[71].mxu0  ;;  %v2089_v53 = vmax.f32 %v2083_v48, 0.0 }
0x11a4   :  { %v2090_v55 = vmax.f32 %v2086_v51, 0.0 }
0x11a6   :  { %v2385_v56 = vpack.c.bf16 %v2090_v55, %v2089_v53 }
0x11a8   :  { %2727 = vmatmul.mubr.bf16.vlgmr.msra.gmra.mrb[60].mxu1 %v2385_v56 }
0x127b   :  { %v2204_v58 = vpop.f32.mrb[60].mxu1 }
0x127c   :  { %v2205_v59 = vadd.f32 %v2367_v0, %v2204_v58  ;;  %v2728_v60 = vpop.f32.mrb[61].mxu1 }
0x127d   :  { %v2207_v6 = vpop.f32.mrb[62].mxu1 }
0x127e   :  { %v2208_v61 = vadd.f32 %v2367_v0, %v2207_v6  ;;  %v2729_v62 = vpop.f32.mrb[63].mxu1  ;;  %v2211_v63 = vadd.f32 %v2205_v59, %v2013_v39 }
0x1280   :  { %v2215_v1 = vsel %vm129_vm1, %v2211_v63, 0.0  ;;  %v2212_v2 = vadd.f32 %v2208_v61, %v2014_v40 }
0x1281   :  { %2216 = vadd.xlane.f32.xlu0 %v2215_v1 }
0x1282   :  { %v2218_v3 = vsel %vm129_vm1, %v2212_v2, 0.0 }
0x1283   :  { %2219 = vadd.xlane.f32.xlu1 %v2218_v3 }
0x130e   :  { %v2217_v4 = vpop.xlane.xlu0 %2216 }
0x130f   :  { %v2221_v43 = vmul.f32 0.03125, %v2217_v4 }
0x1310   :  { %v2220_v46 = vpop.xlane.xlu1 %2219 }
0x1311   :  { %v2223_v5 = vsub.f32 %v2211_v63, %v2221_v43  ;;  %v2222_v7 = vmul.f32 0.03125, %v2220_v46 }
0x1313   :  { %v2224_v54 = vsub.f32 %v2212_v2, %v2222_v7  ;;  %v2225_v9 = vmul.f32 %v2223_v5, %v2223_v5 }
0x1315   :  { %v2227_v57 = vsel %vm129_vm1, %v2225_v9, 0.0  ;;  %v2226_v10 = vmul.f32 %v2224_v54, %v2224_v54 }
0x1316   :  { %2228 = vadd.xlane.f32.xlu0 %v2227_v57 }
0x1317   :  { %v2230_v11 = vsel %vm129_vm1, %v2226_v10, 0.0 }
0x1318   :  { %2231 = vadd.xlane.f32.xlu1 %v2230_v11 }
0x13a3   :  { %v2229_v14 = vpop.xlane.xlu0 %2228 }
0x13a4   :  { %v2233_v15 = vmul.f32 0.03125, %v2229_v14 }
0x13a5   :  { %v2232_v16 = vpop.xlane.xlu1 %2231 }
0x13a6   :  { %v2235_v17 = vadd.f32 1e-05, %v2233_v15  ;;  %v2234_v8 = vmul.f32 0.03125, %v2232_v16 }
0x13a8   :  { %2819 = vrsqrt.f32 %v2235_v17  ;;  %v2236_v12 = vadd.f32 1e-05, %v2234_v8 }
0x13aa   :  { %2821 = vrsqrt.f32 %v2236_v12 }
0x13b2   :  { %v2820_v13 = vpop.eup %2819 }
0x13b3   :  { %v2239_v19 = vmul.f32 %v2820_v13, %v2223_v5 }
0x13b4   :  { %v2822_v20 = vpop.eup %2821 }
0x13b5   :  { %v2247_v22 = vmul.f32 %v2377_v18, %v2239_v19  ;;  %v2240_v23 = vmul.f32 %v2822_v20, %v2224_v54 }
0x13b7   :  { %v2248_v24 = vmul.f32 %v2377_v18, %v2240_v23  ;;  %v2255_v25 = vadd.f32 %v2378_v21, %v2247_v22 }
0x13b9   :  { %v2256_v26 = vadd.f32 %v2378_v21, %v2248_v24  ;;  %2257 = vst.msk [vmem:[#allocation10] sm:$0xff] %vm129_vm1, %v2255_v25 }
0x13bb   :  { %2258 = vst.msk [vmem:[#allocation10 + $0x8] sm:$0xff] %vm129_vm1, %v2256_v26 }
0x13bc   :  { %2924 = shalt.err (!%p2921_p8)
}
0x13bd   :  { %s2925_s21 = scalar_lea.hbm %s3446_s14, 256 }
0x13be   :  { %p2926_p9 = scmp.ne.s32.totalorder %s3446_s14, %s2925_s21  ;;  %p2929_p10 = scmp.lt.u32.totalorder %s2925_s21, %s3446_s14 }
0x13c0   :  { %p2931_p11 = pnand %p2929_p10, %p2926_p9 }
0x13c2   :  { %2934 = shalt.err (!%p2931_p11)
}
0x13c3   :  { %s2952_s30 = smov 128   ;;  %s2953_s23 = smov 8  }
0x13c4   :  { %2270 = dma.vmem_to_hbm [thread:$0]  %s2265_s5, 256, %s3446_s14, [#allocation4], %s2952_s30, %s2952_s30, %s2953_s23  }
0x13c5   :  { %2941 = dma.done.wait [#allocation4], 256  }
0x13c6   :  { %2942 = vsyncadd [#allocation4], 4294967040 }
0x13c7   :  { %2274 = vsyncpa [#allocation3], 1 }
0x13c8   :  { %2275 = vsyncpa [#allocation6], 1 }
0x13c9   :  { %2276 = vsyncpa [#allocation9], 1 }
0x13ca   :  { %2277 = vsyncpa [#allocation4], 1 }

</bundles_post_ra>
